<compile_context>
chip_gen: v5e
topology: v5e:2x2
jax: 0.10.0
libtpu: 0.0.40
codegen_flags: <defaults>
</compile_context>

<pallas_src>
import math

import jax
import jax.numpy as jnp
from jax.experimental import pallas as pl
from jax.experimental.pallas import tpu as pltpu


# --------------------------- small helpers -----------------------------------

_TILE_CANDIDATES = (2048, 1024, 512, 256, 128)
_SB_UNSET = object()
_SB_MODE = _SB_UNSET
_VMEM_LIMIT = None


def _round_up(n, m):
    return ((n + m - 1) // m) * m


def _pick_tile(n_padded):
    """Largest candidate tile that divides an already-128-padded axis."""
    for c in _TILE_CANDIDATES:
        if n_padded % c == 0:
            return c
    return 128  # unreachable: n_padded is a multiple of 128


def _pick_batch_block(B, T, target_rows=256):
    """Fold batch elements into the matmul M dimension so second-stage / FFN matmuls
    fill the 256-wide v6e/v7x MXU when T is small.  Smallest divisor of B reaching
    target_rows keeps some grid steps for v7x's 2 TCs; else fold the whole batch."""
    for bb in range(1, B + 1):
        if B % bb == 0 and bb * T >= target_rows:
            return bb
    return B


def _vmem_limit_bytes():
    """~80% of the chip's per-core VMEM (≈100 MiB v5e/v6e, ≈51 MiB v7x)."""
    global _VMEM_LIMIT
    if _VMEM_LIMIT is None:
        try:
            cap = pltpu.get_tpu_info().vmem_capacity_bytes
            _VMEM_LIMIT = max(32 << 20, int(cap * 0.8))
        except Exception:
            _VMEM_LIMIT = 64 << 20
    return _VMEM_LIMIT


def _single_buffer_mode():
    """pl.Buffered(1) for grid-invariant weight blocks (default double-buffering
    reserves 2x VMEM for blocks that never change across the batch grid; matters most
    on v7x's 64 MiB/TC VMEM).  Probed once with a tiny kernel so builds that reject
    pipeline_mode fall back to the default cleanly."""
    global _SB_MODE
    if _SB_MODE is _SB_UNSET:
        try:
            mode = pl.Buffered(1)

            def _probe(x_ref, o_ref):
                o_ref[...] = x_ref[...] + 1.0

            with jax.ensure_compile_time_eval():
                out = pl.pallas_call(
                    _probe,
                    out_shape=jax.ShapeDtypeStruct((8, 128), jnp.float32),
                    grid=(1,),
                    in_specs=[pl.BlockSpec((8, 128), lambda i: (0, 0),
                                           pipeline_mode=mode)],
                    out_specs=pl.BlockSpec((8, 128), lambda i: (0, 0)),
                )(jnp.zeros((8, 128), jnp.float32))
                jax.block_until_ready(out)
            _SB_MODE = mode
        except Exception:
            _SB_MODE = None
    return _SB_MODE


def _layer_norm(v, g, b, eps=1e-5):
    mu = jnp.mean(v, axis=-1, keepdims=True)
    var = jnp.mean((v - mu) ** 2, axis=-1, keepdims=True)
    return (v - mu) * jax.lax.rsqrt(var + eps) * g + b


# --------------------------- fused per-layer kernel ---------------------------
# One grid step = Bb batch elements: causal-DFT token mixing over (memory, segment),
# add&norm, FFN, add&norm.  Mixing is per batch element (short static unroll) with
# [cos;sin] rows stacked (M = 2T); everything after is done on the batch-folded
# (Bb*T, D) slab so M = Bb*T fills the wide MXU.  Only f32 slabs (sublane-aligned,
# T % 8 == 0) are concatenated/sliced inside the kernel; bf16 data is only touched
# via leading-dim ref indexing.

def _layer_kernel(mem_ref, h_ref, css_m_ref, css_s_ref, cd_ref, sd_ref,
                  g1_ref, b1_ref, w1_ref, c1_ref, w2_ref, c2_ref,
                  g2_ref, b2_ref, o_ref):
    bb_n, T, D = h_ref.shape
    css_m = css_m_ref[...]
    css_s = css_s_ref[...]

    a_rows, b_rows, h_rows = [], [], []
    for b in range(bb_n):                      # static unroll over the batch fold
        h_b = h_ref[b]                         # (T, D)  bf16
        # z = [cos; sin] @ [mem_b; h_b] -> (2T, D); columns pre-split at mem_len so the
        # [mem, h] concat never exists in HBM or VMEM.
        z = (jnp.dot(css_m, mem_ref[b], preferred_element_type=jnp.float32)
             + jnp.dot(css_s, h_b, preferred_element_type=jnp.float32))
        a_rows.append(z[:T])                   # Re part (T, D) f32
        b_rows.append(z[T:])                   # Im part (T, D) f32
        h_rows.append(h_b.astype(jnp.float32))

    cat = (lambda xs: xs[0] if len(xs) == 1 else jnp.concatenate(xs, axis=0))
    re = cat(a_rows)                           # (Bb*T, D) f32
    im = cat(b_rows)
    h32 = cat(h_rows)

    # Re(F_seq @ X @ F_hid) = re @ cd - im @ sd, on the batch-folded slab.
    mixed = (jnp.dot(re.astype(jnp.bfloat16), cd_ref[...],
                     preferred_element_type=jnp.float32)
             - jnp.dot(im.astype(jnp.bfloat16), sd_ref[...],
                       preferred_element_type=jnp.float32))

    # add & norm, position-wise FFN, add & norm (f32 arithmetic, bf16 matmul operands)
    hn = _layer_norm(h32 + mixed, g1_ref[...], b1_ref[...])
    ff = jnp.maximum(
        jnp.dot(hn.astype(jnp.bfloat16), w1_ref[...],
                preferred_element_type=jnp.float32) + c1_ref[...], 0.0)
    ff = jnp.dot(ff.astype(jnp.bfloat16), w2_ref[...],
                 preferred_element_type=jnp.float32) + c2_ref[...]
    out = _layer_norm(hn + ff, g2_ref[...], b2_ref[...])

    for b in range(bb_n):
        o_ref[b] = out[b * T:(b + 1) * T].astype(o_ref.dtype)
    # TODO(synk): at production D/d_inner, tile d_inner (w1 cols / w2 rows) with an
    # inner reduction loop (pltpu.emit_pipeline) so weight residency fits v7x 64 MiB.
    # TODO(synk): at large T, tile the stage-1 matmul over (mem+seq) column blocks and
    # skip fully-masked (above-diagonal) tiles instead of multiplying a half-zero css.


def fused_layer(h, mem, mix, lp):
    B, T, D = h.shape
    mem_len = mem.shape[1]
    css_m, css_s, cd, sd = mix
    d_inner = lp["w1"].shape[1]
    bb = _pick_batch_block(B, T)
    sb = _single_buffer_mode()

    def wspec(shape):
        # grid-invariant weight block: single-buffer if this build supports it
        idx = lambda g, _n=len(shape): (0,) * _n
        if sb is not None:
            return pl.BlockSpec(shape, idx, pipeline_mode=sb)
        return pl.BlockSpec(shape, idx)

    return pl.pallas_call(
        _layer_kernel,
        out_shape=jax.ShapeDtypeStruct((B, T, D), jnp.bfloat16),
        grid=(B // bb,),
        in_specs=[
            pl.BlockSpec((bb, mem_len, D), lambda g: (g, 0, 0)),  # memory slab (bf16)
            pl.BlockSpec((bb, T, D), lambda g: (g, 0, 0)),        # segment slab (bf16)
            wspec((2 * T, mem_len)),                              # [cos;sin] mem cols
            wspec((2 * T, T)),                                    # [cos;sin] seg cols
            wspec((D, D)),                                        # cd
            wspec((D, D)),                                        # sd
            wspec((1, D)),                                        # g1
            wspec((1, D)),                                        # b1
            wspec((D, d_inner)),                                  # w1
            wspec((1, d_inner)),                                  # c1
            wspec((d_inner, D)),                                  # w2
            wspec((1, D)),                                        # c2
            wspec((1, D)),                                        # g2
            wspec((1, D)),                                        # b2
        ],
        out_specs=pl.BlockSpec((bb, T, D), lambda g: (g, 0, 0)),
        compiler_params=pltpu.CompilerParams(
            dimension_semantics=("parallel",),
            vmem_limit_bytes=_vmem_limit_bytes()),
    )(mem, h, css_m, css_s, cd, sd,
      lp["g1"], lp["b1"], lp["w1"], lp["c1"], lp["w2"], lp["c2"],
      lp["g2"], lp["b2"])


# --------------------------- streaming log-sum-exp head -----------------------
# grid = (token-row tiles, vocab-column tiles).  The vocab axis is a streaming
# log-sum-exp reduction ("arbitrary"); m/l accumulators live in VMEM scratch.
# Logits are computed transposed, (TILE_V, TILE_N), so the tied (V, D) embedding is
# consumed directly (no emb.T copy) and the per-token LSE output is lane-dense.
# The target-logit gather lives OUTSIDE the loop (glue, O(N*D) vs O(N*V*D)).

def _lse_kernel(h_ref, w_ref, b_ref, o_ref, m_sc, l_sc):
    v = pl.program_id(1)

    @pl.when(v == 0)
    def _():
        m_sc[...] = jnp.full(m_sc.shape, -jnp.inf, jnp.float32)
        l_sc[...] = jnp.zeros(l_sc.shape, jnp.float32)

    # logits^T tile: (TILE_V, TILE_N) = W_tile (TILE_V, D) @ H_tile^T (D, TILE_N);
    # both operands arrive bf16 (no per-tile cast), accumulation in f32.
    logits_t = jax.lax.dot_general(
        w_ref[...], h_ref[...],
        dimension_numbers=(((1,), (1,)), ((), ())),
        preferred_element_type=jnp.float32) + b_ref[...]

    m_new = jnp.maximum(m_sc[...], jnp.max(logits_t, axis=0, keepdims=True))
    l_sc[...] = (jnp.exp(m_sc[...] - m_new) * l_sc[...]
                 + jnp.sum(jnp.exp(logits_t - m_new), axis=0, keepdims=True))
    m_sc[...] = m_new

    @pl.when(v == pl.num_programs(1) - 1)
    def _():
        o_ref[0] = m_sc[...] + jnp.log(l_sc[...])       # per-token LSE, lane-dense


def nll_loss(h_sb, y_flat, params):
    """h_sb: (N, D) bf16 batch-major hidden rows; y_flat: (N,) int32 targets."""
    N, D = h_sb.shape
    head_w = params["head_w"]            # (V_pad, D) bf16, padded rows zero
    head_b = params["head_b"]            # (V_pad, 1) f32, padded rows -1e30
    V_pad = head_w.shape[0]
    tile_v = _pick_tile(V_pad)
    N_pad = _round_up(N, 128)
    tile_n = _pick_tile(N_pad)
    if N_pad > N:
        h_pad = jnp.concatenate(
            [h_sb, jnp.zeros((N_pad - N, D), h_sb.dtype)], axis=0)
    else:
        h_pad = h_sb
    n_n, n_v = N_pad // tile_n, V_pad // tile_v

    lse = pl.pallas_call(
        _lse_kernel,
        out_shape=jax.ShapeDtypeStruct((n_n, 1, tile_n), jnp.float32),
        grid=(n_n, n_v),
        in_specs=[
            pl.BlockSpec((tile_n, D), lambda i, v: (i, 0)),   # hidden rows (bf16)
            pl.BlockSpec((tile_v, D), lambda i, v: (v, 0)),   # tied head weight (bf16)
            pl.BlockSpec((tile_v, 1), lambda i, v: (v, 0)),   # head bias column
        ],
        out_specs=pl.BlockSpec((1, 1, tile_n), lambda i, v: (i, 0, 0)),
        scratch_shapes=[pltpu.VMEM((1, tile_n), jnp.float32),   # running max
                        pltpu.VMEM((1, tile_n), jnp.float32)],  # running sum
        compiler_params=pltpu.CompilerParams(
            dimension_semantics=("parallel", "arbitrary"),
            vmem_limit_bytes=_vmem_limit_bytes()),
    )(h_pad, head_w, head_b)
    lse = lse.reshape(N_pad)[:N]

    # Target logit gathered ONCE outside the streaming loop: O(N*D) glue work vs the
    # O(N*V*D) head matmul.  Targets are assumed in [0, V).
    # TODO(synk): padding / ignore-index targets are not masked.
    w_y = jnp.take(head_w, y_flat, axis=0).astype(jnp.float32)   # (N, D)
    b_y = head_b[y_flat, 0]
    t_logit = jnp.sum(h_sb.astype(jnp.float32) * w_y, axis=-1) + b_y
    return lse - t_logit


# --------------------------- Parameters --------------------------------------

def init_params(key, n_token, n_layer, d_model, d_inner, tgt_len, mem_len):
    keys = jax.random.split(key, 1 + 2 * n_layer)
    # Tied weight: embedder.head.weight == predictor.head.weight.  A single bf16 copy
    # (padded to a 128-multiple vocab for lane-dense head tiles) serves both the
    # embedding gather and the log-softmax head; padded vocab rows get bias -1e30 so
    # they contribute nothing to the log-sum-exp.
    emb = 0.02 * jax.random.normal(keys[0], (n_token, d_model), jnp.float32)
    v_pad = _round_up(n_token, 128)
    pad_v = v_pad - n_token
    head_w = jnp.concatenate(
        [emb.astype(jnp.bfloat16), jnp.zeros((pad_v, d_model), jnp.bfloat16)], axis=0)
    head_b = jnp.concatenate(
        [jnp.zeros((n_token, 1), jnp.float32),
         jnp.full((pad_v, 1), -1e30, jnp.float32)], axis=0)
    # TODO(synk): optional fp8 (e4m3) head-weight copy for v7x's fp8 MXU path.

    layers = []
    k = 1
    for _ in range(n_layer):
        w1 = 0.02 * jax.random.normal(keys[k], (d_model, d_inner), jnp.float32); k += 1
        w2 = 0.02 * jax.random.normal(keys[k], (d_inner, d_model), jnp.float32); k += 1
        layers.append(dict(
            g1=jnp.ones((1, d_model), jnp.float32),
            b1=jnp.zeros((1, d_model), jnp.float32),
            w1=w1.astype(jnp.bfloat16),
            c1=jnp.zeros((1, d_inner), jnp.float32),
            w2=w2.astype(jnp.bfloat16),
            c2=jnp.zeros((1, d_model), jnp.float32),
            g2=jnp.ones((1, d_model), jnp.float32),
            b2=jnp.zeros((1, d_model), jnp.float32),
        ))

    # Causal real-DFT mixing matrices (FNet-AR token mixing over mem+segment),
    # pre-stacked ([cos; sin]) and pre-split at column mem_len so the kernel never
    # concatenates memory and segment.
    S = mem_len + tgt_len
    n = jnp.arange(S, dtype=jnp.float32)
    kpos = jnp.arange(tgt_len, dtype=jnp.float32) + mem_len
    ang_s = 2.0 * math.pi * jnp.outer(kpos, n) / S
    causal = (n[None, :] <= kpos[:, None]).astype(jnp.float32)
    cs = jnp.cos(ang_s) * causal / S
    ss = jnp.sin(ang_s) * causal / S
    css = jnp.concatenate([cs, ss], axis=0)                    # (2T, S)
    css_mem = css[:, :mem_len].astype(jnp.bfloat16)            # (2T, mem_len)
    css_seg = css[:, mem_len:].astype(jnp.bfloat16)            # (2T, T)
    d = jnp.arange(d_model, dtype=jnp.float32)
    ang_d = 2.0 * math.pi * jnp.outer(d, d) / d_model
    cd = (jnp.cos(ang_d) / d_model).astype(jnp.bfloat16)
    sd = (jnp.sin(ang_d) / d_model).astype(jnp.bfloat16)
    return dict(emb=emb, head_w=head_w, head_b=head_b, layers=layers,
                mix=(css_mem, css_seg, cd, sd))


# --------------------------- Forward ------------------------------------------

def blur_fnetar_forward(params, x_tokens, y_tokens, memory):
    """x_tokens, y_tokens: [T, B] int32 (seq-major); memory: tuple of [B, mem_len, D]."""
    T, B = x_tokens.shape
    D = params["head_w"].shape[1]
    mem_len = memory[0].shape[1]

    # AdaptiveInput with cutoffs=[] degenerates to a plain (tied) embedding lookup.
    # Gather directly in batch-major order (index with x^T) so no [T,B,D]->[B,T,D]
    # activation transpose ever hits HBM; activations are bf16 between layers.
    # TODO(synk): adaptive cluster tails / projections (div_val>1, cutoffs!=[]) omitted.
    x_bm = x_tokens.T                                        # [B, T] (tiny int transpose)
    h = jnp.take(params["head_w"], x_bm, axis=0)             # [B, T, D] bf16
    # drop_out: identity (deterministic eval)

    new_memory = []
    for i, lp in enumerate(params["layers"]):
        mem_i = memory[i].astype(jnp.bfloat16)
        # XL memory update: cat(old_mem, layer_input)[:, -mem_len:], detached —
        # expressed as a slice so the concatenated tensor is never materialized.
        if mem_len <= T:
            nm = h[:, T - mem_len:, :]
        else:
            nm = jnp.concatenate([mem_i[:, T:, :], h], axis=1)
        new_memory.append(jax.lax.stop_gradient(nm))
        h = fused_layer(h, mem_i, params["mix"], lp)         # [B, T, D] bf16

    # Predictor: AdaptiveLogSoftmax with cutoffs=[] == full log-softmax head (tied W).
    h_sb = h.reshape(B * T, D)                               # batch-major flat (no transpose)
    y_bm = y_tokens.T.reshape(B * T)                         # targets in matching order
    nll_bm = nll_loss(h_sb, y_bm, params)                    # (B*T,) NLL, batch-major
    # PyTorch computes the head on x.view(-1, d) (t-major) and then does the raw
    # reinterpretation (-output).view(y.size(1), -1).  Reproduce it exactly with a
    # tiny (B, T) permute of the per-token NLL vector (activations stay batch-major).
    loss = nll_bm.reshape(B, T).T.reshape(B, T)
    return loss, tuple(new_memory)


# --------------------------- Main ---------------------------------------------

if __name__ == "__main__":
    n_token, n_layer, n_head, d_model = 256, 2, 2, 32
    d_head, d_inner = 16, 64
    tgt_len = mem_len = 8
    B = 2

    # Probe pipeline_mode support eagerly (outside any jit trace).
    _single_buffer_mode()

    key = jax.random.PRNGKey(0)
    kp, kx, ky, km = jax.random.split(key, 4)
    params = init_params(kp, n_token, n_layer, d_model, d_inner, tgt_len, mem_len)

    x = jax.random.randint(kx, (tgt_len, B), 0, n_token, dtype=jnp.int32)
    y = jax.random.randint(ky, (tgt_len, B), 0, n_token, dtype=jnp.int32)
    memory = tuple(
        (0.02 * jax.random.normal(jax.random.fold_in(km, i),
                                  (B, mem_len, d_model), jnp.float32)
         ).astype(jnp.bfloat16)
        for i in range(n_layer))

    fwd = jax.jit(blur_fnetar_forward)
    loss, new_memory = fwd(params, x, y, memory)
    jax.block_until_ready((loss, new_memory))
    assert loss.shape == (B, tgt_len)
    assert all(m.shape == (B, mem_len, d_model) for m in new_memory)
    assert bool(jnp.all(jnp.isfinite(loss)))
    print("KERNEL_OK")
</pallas_src>

<mosaic_0001>
module attributes {stable_mosaic.version = 11 : i64} {
  func.func @_probe(%arg0: i32, %arg1: memref<8x128xf32, #tpu.memory_space<vmem>>, %arg2: memref<8x128xf32, #tpu.memory_space<vmem>>) attributes {dimension_semantics = [#tpu.dimension_semantics<arbitrary>], iteration_bounds = array<i64: 1>, scalar_prefetch = 0 : i64, scratch_operands = 0 : i64, tpu.core_type = #tpu.core_type<tc>, window_params = [{pipeline_mode = #tpu.pipeline_mode<synchronous>, transform_indices = @transform_0, window_bounds = array<i64: 8, 128>}, {pipeline_mode = #tpu.pipeline_mode<synchronous>, transform_indices = @transform_1, window_bounds = array<i64: 8, 128>}]} {
    %c0 = arith.constant 0 : index
    %c0_0 = arith.constant 0 : index
    %0 = vector.load %arg1[%c0, %c0_0] : memref<8x128xf32, #tpu.memory_space<vmem>>, vector<8x128xf32>
    %cst = arith.constant 1.000000e+00 : f32
    %1 = vector.broadcast %cst : f32 to vector<8x128xf32>
    %2 = arith.addf %0, %1 : vector<8x128xf32>
    %c0_1 = arith.constant 0 : index
    %c0_2 = arith.constant 0 : index
    %3 = vector.load %arg2[%c0_1, %c0_2] : memref<8x128xf32, #tpu.memory_space<vmem>>, vector<8x128xf32>
    tpu.vector_store %arg2[%c0_1, %c0_2], %2 {strides = array<i32>} : memref<8x128xf32, #tpu.memory_space<vmem>>, vector<8x128xf32>,
    return
  }
  func.func @transform_0(%arg0: i32) -> (i32, i32) {
    %c0_i32 = arith.constant 0 : i32
    %c0_i32_0 = arith.constant 0 : i32
    %c0_i32_1 = arith.constant 0 : i32
    return %c0_i32, %c0_i32_0 : i32, i32
  }
  func.func @transform_1(%arg0: i32) -> (i32, i32) {
    %c0_i32 = arith.constant 0 : i32
    %c0_i32_0 = arith.constant 0 : i32
    %c0_i32_1 = arith.constant 0 : i32
    return %c0_i32, %c0_i32_0 : i32, i32
  }
}

module attributes {stable_mosaic.version = 11 : i64} {
  func.func @_layer_kernel(%arg0: i32, %arg1: memref<2x8x32xbf16, #tpu.memory_space<vmem>>, %arg2: memref<2x8x32xbf16, #tpu.memory_space<vmem>>, %arg3: memref<16x8xbf16, #tpu.memory_space<vmem>>, %arg4: memref<16x8xbf16, #tpu.memory_space<vmem>>, %arg5: memref<32x32xbf16, #tpu.memory_space<vmem>>, %arg6: memref<32x32xbf16, #tpu.memory_space<vmem>>, %arg7: memref<1x32xf32, #tpu.memory_space<vmem>>, %arg8: memref<1x32xf32, #tpu.memory_space<vmem>>, %arg9: memref<32x64xbf16, #tpu.memory_space<vmem>>, %arg10: memref<1x64xf32, #tpu.memory_space<vmem>>, %arg11: memref<64x32xbf16, #tpu.memory_space<vmem>>, %arg12: memref<1x32xf32, #tpu.memory_space<vmem>>, %arg13: memref<1x32xf32, #tpu.memory_space<vmem>>, %arg14: memref<1x32xf32, #tpu.memory_space<vmem>>, %arg15: memref<2x8x32xbf16, #tpu.memory_space<vmem>>) attributes {dimension_semantics = [#tpu.dimension_semantics<parallel>], iteration_bounds = array<i64: 1>, scalar_prefetch = 0 : i64, scratch_operands = 0 : i64, tpu.core_type = #tpu.core_type<tc>, window_params = [{transform_indices = @transform_0, window_bounds = array<i64: 2, 8, 32>}, {transform_indices = @transform_1, window_bounds = array<i64: 2, 8, 32>}, {pipeline_mode = #tpu.pipeline_mode<synchronous>, transform_indices = @transform_2, window_bounds = array<i64: 16, 8>}, {pipeline_mode = #tpu.pipeline_mode<synchronous>, transform_indices = @transform_3, window_bounds = array<i64: 16, 8>}, {pipeline_mode = #tpu.pipeline_mode<synchronous>, transform_indices = @transform_4, window_bounds = array<i64: 32, 32>}, {pipeline_mode = #tpu.pipeline_mode<synchronous>, transform_indices = @transform_5, window_bounds = array<i64: 32, 32>}, {pipeline_mode = #tpu.pipeline_mode<synchronous>, transform_indices = @transform_6, window_bounds = array<i64: 1, 32>}, {pipeline_mode = #tpu.pipeline_mode<synchronous>, transform_indices = @transform_7, window_bounds = array<i64: 1, 32>}, {pipeline_mode = #tpu.pipeline_mode<synchronous>, transform_indices = @transform_8, window_bounds = array<i64: 32, 64>}, {pipeline_mode = #tpu.pipeline_mode<synchronous>, transform_indices = @transform_9, window_bounds = array<i64: 1, 64>}, {pipeline_mode = #tpu.pipeline_mode<synchronous>, transform_indices = @transform_10, window_bounds = array<i64: 64, 32>}, {pipeline_mode = #tpu.pipeline_mode<synchronous>, transform_indices = @transform_11, window_bounds = array<i64: 1, 32>}, {pipeline_mode = #tpu.pipeline_mode<synchronous>, transform_indices = @transform_12, window_bounds = array<i64: 1, 32>}, {pipeline_mode = #tpu.pipeline_mode<synchronous>, transform_indices = @transform_13, window_bounds = array<i64: 1, 32>}, {transform_indices = @transform_14, window_bounds = array<i64: 2, 8, 32>}]} {
    %c0 = arith.constant 0 : index
    %c0_0 = arith.constant 0 : index
    %0 = vector.load %arg3[%c0, %c0_0] : memref<16x8xbf16, #tpu.memory_space<vmem>>, vector<16x8xbf16>
    %c0_1 = arith.constant 0 : index
    %c0_2 = arith.constant 0 : index
    %1 = vector.load %arg4[%c0_1, %c0_2] : memref<16x8xbf16, #tpu.memory_space<vmem>>, vector<16x8xbf16>
    %c0_3 = arith.constant 0 : index
    %c0_4 = arith.constant 0 : index
    %c0_5 = arith.constant 0 : index
    %2 = vector.load %arg2[%c0_3, %c0_4, %c0_5] : memref<2x8x32xbf16, #tpu.memory_space<vmem>>, vector<1x8x32xbf16>
    %3 = vector.shape_cast %2 : vector<1x8x32xbf16> to vector<8x32xbf16>
    %c0_6 = arith.constant 0 : index
    %c0_7 = arith.constant 0 : index
    %c0_8 = arith.constant 0 : index
    %4 = vector.load %arg1[%c0_6, %c0_7, %c0_8] : memref<2x8x32xbf16, #tpu.memory_space<vmem>>, vector<1x8x32xbf16>
    %5 = vector.shape_cast %4 : vector<1x8x32xbf16> to vector<8x32xbf16>
    %cst = arith.constant dense<0.000000e+00> : vector<16x32xf32>
    %6 = tpu.matmul %0, %5, %cst {dimension_numbers = #tpu.dot_dimension_numbers<[1], [0], [0], [1], [0, 0, 1, 1], [], []>} : vector<16x8xbf16>, vector<8x32xbf16>, vector<16x32xf32> -> vector<16x32xf32>
    %cst_9 = arith.constant dense<0.000000e+00> : vector<16x32xf32>
    %7 = tpu.matmul %1, %3, %cst_9 {dimension_numbers = #tpu.dot_dimension_numbers<[1], [0], [0], [1], [0, 0, 1, 1], [], []>} : vector<16x8xbf16>, vector<8x32xbf16>, vector<16x32xf32> -> vector<16x32xf32>
    %8 = arith.addf %6, %7 : vector<16x32xf32>
    %9 = vector.extract_strided_slice %8 {offsets = [0, 0], sizes = [8, 32], strides = [1, 1]} : vector<16x32xf32> to vector<8x32xf32>
    %10 = vector.extract_strided_slice %8 {offsets = [8, 0], sizes = [8, 32], strides = [1, 1]} : vector<16x32xf32> to vector<8x32xf32>
    %11 = arith.extf %3 : vector<8x32xbf16> to vector<8x32xf32>
    %c1 = arith.constant 1 : index
    %c0_10 = arith.constant 0 : index
    %c0_11 = arith.constant 0 : index
    %12 = vector.load %arg2[%c1, %c0_10, %c0_11] : memref<2x8x32xbf16, #tpu.memory_space<vmem>>, vector<1x8x32xbf16>
    %13 = vector.shape_cast %12 : vector<1x8x32xbf16> to vector<8x32xbf16>
    %c1_12 = arith.constant 1 : index
    %c0_13 = arith.constant 0 : index
    %c0_14 = arith.constant 0 : index
    %14 = vector.load %arg1[%c1_12, %c0_13, %c0_14] : memref<2x8x32xbf16, #tpu.memory_space<vmem>>, vector<1x8x32xbf16>
    %15 = vector.shape_cast %14 : vector<1x8x32xbf16> to vector<8x32xbf16>
    %cst_15 = arith.constant dense<0.000000e+00> : vector<16x32xf32>
    %16 = tpu.matmul %0, %15, %cst_15 {dimension_numbers = #tpu.dot_dimension_numbers<[1], [0], [0], [1], [0, 0, 1, 1], [], []>} : vector<16x8xbf16>, vector<8x32xbf16>, vector<16x32xf32> -> vector<16x32xf32>
    %cst_16 = arith.constant dense<0.000000e+00> : vector<16x32xf32>
    %17 = tpu.matmul %1, %13, %cst_16 {dimension_numbers = #tpu.dot_dimension_numbers<[1], [0], [0], [1], [0, 0, 1, 1], [], []>} : vector<16x8xbf16>, vector<8x32xbf16>, vector<16x32xf32> -> vector<16x32xf32>
    %18 = arith.addf %16, %17 : vector<16x32xf32>
    %19 = vector.extract_strided_slice %18 {offsets = [0, 0], sizes = [8, 32], strides = [1, 1]} : vector<16x32xf32> to vector<8x32xf32>
    %20 = vector.extract_strided_slice %18 {offsets = [8, 0], sizes = [8, 32], strides = [1, 1]} : vector<16x32xf32> to vector<8x32xf32>
    %21 = arith.extf %13 : vector<8x32xbf16> to vector<8x32xf32>
    %22 = tpu.concatenate %9, %19 in 0 : vector<8x32xf32>, vector<8x32xf32> -> vector<16x32xf32>
    %23 = tpu.concatenate %10, %20 in 0 : vector<8x32xf32>, vector<8x32xf32> -> vector<16x32xf32>
    %24 = tpu.concatenate %11, %21 in 0 : vector<8x32xf32>, vector<8x32xf32> -> vector<16x32xf32>
    %25 = arith.truncf %22 : vector<16x32xf32> to vector<16x32xbf16>
    %c0_17 = arith.constant 0 : index
    %c0_18 = arith.constant 0 : index
    %26 = vector.load %arg5[%c0_17, %c0_18] : memref<32x32xbf16, #tpu.memory_space<vmem>>, vector<32x32xbf16>
    %cst_19 = arith.constant dense<0.000000e+00> : vector<16x32xf32>
    %27 = tpu.matmul %25, %26, %cst_19 {dimension_numbers = #tpu.dot_dimension_numbers<[1], [0], [0], [1], [0, 0, 1, 1], [], []>} : vector<16x32xbf16>, vector<32x32xbf16>, vector<16x32xf32> -> vector<16x32xf32>
    %28 = arith.truncf %23 : vector<16x32xf32> to vector<16x32xbf16>
    %c0_20 = arith.constant 0 : index
    %c0_21 = arith.constant 0 : index
    %29 = vector.load %arg6[%c0_20, %c0_21] : memref<32x32xbf16, #tpu.memory_space<vmem>>, vector<32x32xbf16>
    %cst_22 = arith.constant dense<0.000000e+00> : vector<16x32xf32>
    %30 = tpu.matmul %28, %29, %cst_22 {dimension_numbers = #tpu.dot_dimension_numbers<[1], [0], [0], [1], [0, 0, 1, 1], [], []>} : vector<16x32xbf16>, vector<32x32xbf16>, vector<16x32xf32> -> vector<16x32xf32>
    %31 = arith.subf %27, %30 : vector<16x32xf32>
    %32 = arith.addf %24, %31 : vector<16x32xf32>
    %c0_23 = arith.constant 0 : index
    %c0_24 = arith.constant 0 : index
    %33 = vector.load %arg7[%c0_23, %c0_24] : memref<1x32xf32, #tpu.memory_space<vmem>>, vector<1x32xf32>
    %c0_25 = arith.constant 0 : index
    %c0_26 = arith.constant 0 : index
    %34 = vector.load %arg8[%c0_25, %c0_26] : memref<1x32xf32, #tpu.memory_space<vmem>>, vector<1x32xf32>
    %cst_27 = arith.constant dense<0.000000e+00> : vector<16xf32>
    %35 = vector.multi_reduction <add>, %32, %cst_27 [1] : vector<16x32xf32> to vector<16xf32>
    %36 = vector.shape_cast %35 : vector<16xf32> to vector<16x1xf32>
    %cst_28 = arith.constant 3.200000e+01 : f32
    %37 = vector.broadcast %cst_28 : f32 to vector<16x1xf32>
    %38 = arith.divf %36, %37 : vector<16x1xf32>
    %39 = vector.broadcast %38 : vector<16x1xf32> to vector<16x32xf32>
    %40 = arith.subf %32, %39 : vector<16x32xf32>
    %41 = arith.mulf %40, %40 : vector<16x32xf32>
    %cst_29 = arith.constant dense<0.000000e+00> : vector<16xf32>
    %42 = vector.multi_reduction <add>, %41, %cst_29 [1] : vector<16x32xf32> to vector<16xf32>
    %43 = vector.shape_cast %42 : vector<16xf32> to vector<16x1xf32>
    %cst_30 = arith.constant 3.200000e+01 : f32
    %44 = vector.broadcast %cst_30 : f32 to vector<16x1xf32>
    %45 = arith.divf %43, %44 : vector<16x1xf32>
    %46 = vector.broadcast %38 : vector<16x1xf32> to vector<16x32xf32>
    %47 = arith.subf %32, %46 : vector<16x32xf32>
    %cst_31 = arith.constant 9.99999974E-6 : f32
    %48 = vector.broadcast %cst_31 : f32 to vector<16x1xf32>
    %49 = arith.addf %45, %48 : vector<16x1xf32>
    %50 = math.rsqrt %49 : vector<16x1xf32>
    %51 = vector.broadcast %50 : vector<16x1xf32> to vector<16x32xf32>
    %52 = arith.mulf %47, %51 : vector<16x32xf32>
    %53 = vector.broadcast %33 : vector<1x32xf32> to vector<16x32xf32>
    %54 = arith.mulf %52, %53 : vector<16x32xf32>
    %55 = vector.broadcast %34 : vector<1x32xf32> to vector<16x32xf32>
    %56 = arith.addf %54, %55 : vector<16x32xf32>
    %57 = arith.truncf %56 : vector<16x32xf32> to vector<16x32xbf16>
    %c0_32 = arith.constant 0 : index
    %c0_33 = arith.constant 0 : index
    %58 = vector.load %arg9[%c0_32, %c0_33] : memref<32x64xbf16, #tpu.memory_space<vmem>>, vector<32x64xbf16>
    %cst_34 = arith.constant dense<0.000000e+00> : vector<16x64xf32>
    %59 = tpu.matmul %57, %58, %cst_34 {dimension_numbers = #tpu.dot_dimension_numbers<[1], [0], [0], [1], [0, 0, 1, 1], [], []>} : vector<16x32xbf16>, vector<32x64xbf16>, vector<16x64xf32> -> vector<16x64xf32>
    %c0_35 = arith.constant 0 : index
    %c0_36 = arith.constant 0 : index
    %60 = vector.load %arg10[%c0_35, %c0_36] : memref<1x64xf32, #tpu.memory_space<vmem>>, vector<1x64xf32>
    %61 = vector.broadcast %60 : vector<1x64xf32> to vector<16x64xf32>
    %62 = arith.addf %59, %61 : vector<16x64xf32>
    %cst_37 = arith.constant 0.000000e+00 : f32
    %63 = vector.broadcast %cst_37 : f32 to vector<16x64xf32>
    %64 = arith.maximumf %62, %63 : vector<16x64xf32>
    %65 = arith.truncf %64 : vector<16x64xf32> to vector<16x64xbf16>
    %c0_38 = arith.constant 0 : index
    %c0_39 = arith.constant 0 : index
    %66 = vector.load %arg11[%c0_38, %c0_39] : memref<64x32xbf16, #tpu.memory_space<vmem>>, vector<64x32xbf16>
    %cst_40 = arith.constant dense<0.000000e+00> : vector<16x32xf32>
    %67 = tpu.matmul %65, %66, %cst_40 {dimension_numbers = #tpu.dot_dimension_numbers<[1], [0], [0], [1], [0, 0, 1, 1], [], []>} : vector<16x64xbf16>, vector<64x32xbf16>, vector<16x32xf32> -> vector<16x32xf32>
    %c0_41 = arith.constant 0 : index
    %c0_42 = arith.constant 0 : index
    %68 = vector.load %arg12[%c0_41, %c0_42] : memref<1x32xf32, #tpu.memory_space<vmem>>, vector<1x32xf32>
    %69 = vector.broadcast %68 : vector<1x32xf32> to vector<16x32xf32>
    %70 = arith.addf %67, %69 : vector<16x32xf32>
    %71 = arith.addf %56, %70 : vector<16x32xf32>
    %c0_43 = arith.constant 0 : index
    %c0_44 = arith.constant 0 : index
    %72 = vector.load %arg13[%c0_43, %c0_44] : memref<1x32xf32, #tpu.memory_space<vmem>>, vector<1x32xf32>
    %c0_45 = arith.constant 0 : index
    %c0_46 = arith.constant 0 : index
    %73 = vector.load %arg14[%c0_45, %c0_46] : memref<1x32xf32, #tpu.memory_space<vmem>>, vector<1x32xf32>
    %cst_47 = arith.constant dense<0.000000e+00> : vector<16xf32>
    %74 = vector.multi_reduction <add>, %71, %cst_47 [1] : vector<16x32xf32> to vector<16xf32>
    %75 = vector.shape_cast %74 : vector<16xf32> to vector<16x1xf32>
    %cst_48 = arith.constant 3.200000e+01 : f32
    %76 = vector.broadcast %cst_48 : f32 to vector<16x1xf32>
    %77 = arith.divf %75, %76 : vector<16x1xf32>
    %78 = vector.broadcast %77 : vector<16x1xf32> to vector<16x32xf32>
    %79 = arith.subf %71, %78 : vector<16x32xf32>
    %80 = arith.mulf %79, %79 : vector<16x32xf32>
    %cst_49 = arith.constant dense<0.000000e+00> : vector<16xf32>
    %81 = vector.multi_reduction <add>, %80, %cst_49 [1] : vector<16x32xf32> to vector<16xf32>
    %82 = vector.shape_cast %81 : vector<16xf32> to vector<16x1xf32>
    %cst_50 = arith.constant 3.200000e+01 : f32
    %83 = vector.broadcast %cst_50 : f32 to vector<16x1xf32>
    %84 = arith.divf %82, %83 : vector<16x1xf32>
    %85 = vector.broadcast %77 : vector<16x1xf32> to vector<16x32xf32>
    %86 = arith.subf %71, %85 : vector<16x32xf32>
    %cst_51 = arith.constant 9.99999974E-6 : f32
    %87 = vector.broadcast %cst_51 : f32 to vector<16x1xf32>
    %88 = arith.addf %84, %87 : vector<16x1xf32>
    %89 = math.rsqrt %88 : vector<16x1xf32>
    %90 = vector.broadcast %89 : vector<16x1xf32> to vector<16x32xf32>
    %91 = arith.mulf %86, %90 : vector<16x32xf32>
    %92 = vector.broadcast %72 : vector<1x32xf32> to vector<16x32xf32>
    %93 = arith.mulf %91, %92 : vector<16x32xf32>
    %94 = vector.broadcast %73 : vector<1x32xf32> to vector<16x32xf32>
    %95 = arith.addf %93, %94 : vector<16x32xf32>
    %96 = vector.extract_strided_slice %95 {offsets = [0, 0], sizes = [8, 32], strides = [1, 1]} : vector<16x32xf32> to vector<8x32xf32>
    %97 = arith.truncf %96 : vector<8x32xf32> to vector<8x32xbf16>
    %c0_52 = arith.constant 0 : index
    %c0_53 = arith.constant 0 : index
    %c0_54 = arith.constant 0 : index
    %98 = vector.load %arg15[%c0_52, %c0_53, %c0_54] : memref<2x8x32xbf16, #tpu.memory_space<vmem>>, vector<1x8x32xbf16>
    %99 = vector.shape_cast %98 : vector<1x8x32xbf16> to vector<8x32xbf16>
    %100 = vector.shape_cast %97 : vector<8x32xbf16> to vector<1x8x32xbf16>
    tpu.vector_store %arg15[%c0_52, %c0_53, %c0_54], %100 {strides = array<i32>} : memref<2x8x32xbf16, #tpu.memory_space<vmem>>, vector<1x8x32xbf16>,
    %101 = vector.extract_strided_slice %95 {offsets = [8, 0], sizes = [8, 32], strides = [1, 1]} : vector<16x32xf32> to vector<8x32xf32>
    %102 = arith.truncf %101 : vector<8x32xf32> to vector<8x32xbf16>
    %c1_55 = arith.constant 1 : index
    %c0_56 = arith.constant 0 : index
    %c0_57 = arith.constant 0 : index
    %103 = vector.load %arg15[%c1_55, %c0_56, %c0_57] : memref<2x8x32xbf16, #tpu.memory_space<vmem>>, vector<1x8x32xbf16>
    %104 = vector.shape_cast %103 : vector<1x8x32xbf16> to vector<8x32xbf16>
    %105 = vector.shape_cast %102 : vector<8x32xbf16> to vector<1x8x32xbf16>
    tpu.vector_store %arg15[%c1_55, %c0_56, %c0_57], %105 {strides = array<i32>} : memref<2x8x32xbf16, #tpu.memory_space<vmem>>, vector<1x8x32xbf16>,
    return
  }
  func.func @transform_0(%arg0: i32) -> (i32, i32, i32) {
    %c0_i32 = arith.constant 0 : i32
    %c0_i32_0 = arith.constant 0 : i32
    %c0_i32_1 = arith.constant 0 : i32
    return %arg0, %c0_i32, %c0_i32_0 : i32, i32, i32
  }
  func.func @transform_1(%arg0: i32) -> (i32, i32, i32) {
    %c0_i32 = arith.constant 0 : i32
    %c0_i32_0 = arith.constant 0 : i32
    %c0_i32_1 = arith.constant 0 : i32
    return %arg0, %c0_i32, %c0_i32_0 : i32, i32, i32
  }
  func.func @transform_2(%arg0: i32) -> (i32, i32) {
    %c0_i32 = arith.constant 0 : i32
    %c0_i32_0 = arith.constant 0 : i32
    %c0_i32_1 = arith.constant 0 : i32
    return %c0_i32, %c0_i32_0 : i32, i32
  }
  func.func @transform_3(%arg0: i32) -> (i32, i32) {
    %c0_i32 = arith.constant 0 : i32
    %c0_i32_0 = arith.constant 0 : i32
    %c0_i32_1 = arith.constant 0 : i32
    return %c0_i32, %c0_i32_0 : i32, i32
  }
  func.func @transform_4(%arg0: i32) -> (i32, i32) {
    %c0_i32 = arith.constant 0 : i32
    %c0_i32_0 = arith.constant 0 : i32
    %c0_i32_1 = arith.constant 0 : i32
    return %c0_i32, %c0_i32_0 : i32, i32
  }
  func.func @transform_5(%arg0: i32) -> (i32, i32) {
    %c0_i32 = arith.constant 0 : i32
    %c0_i32_0 = arith.constant 0 : i32
    %c0_i32_1 = arith.constant 0 : i32
    return %c0_i32, %c0_i32_0 : i32, i32
  }
  func.func @transform_6(%arg0: i32) -> (i32, i32) {
    %c0_i32 = arith.constant 0 : i32
    %c0_i32_0 = arith.constant 0 : i32
    %c0_i32_1 = arith.constant 0 : i32
    return %c0_i32, %c0_i32_0 : i32, i32
  }
  func.func @transform_7(%arg0: i32) -> (i32, i32) {
    %c0_i32 = arith.constant 0 : i32
    %c0_i32_0 = arith.constant 0 : i32
    %c0_i32_1 = arith.constant 0 : i32
    return %c0_i32, %c0_i32_0 : i32, i32
  }
  func.func @transform_8(%arg0: i32) -> (i32, i32) {
    %c0_i32 = arith.constant 0 : i32
    %c0_i32_0 = arith.constant 0 : i32
    %c0_i32_1 = arith.constant 0 : i32
    return %c0_i32, %c0_i32_0 : i32, i32
  }
  func.func @transform_9(%arg0: i32) -> (i32, i32) {
    %c0_i32 = arith.constant 0 : i32
    %c0_i32_0 = arith.constant 0 : i32
    %c0_i32_1 = arith.constant 0 : i32
    return %c0_i32, %c0_i32_0 : i32, i32
  }
  func.func @transform_10(%arg0: i32) -> (i32, i32) {
    %c0_i32 = arith.constant 0 : i32
    %c0_i32_0 = arith.constant 0 : i32
    %c0_i32_1 = arith.constant 0 : i32
    return %c0_i32, %c0_i32_0 : i32, i32
  }
  func.func @transform_11(%arg0: i32) -> (i32, i32) {
    %c0_i32 = arith.constant 0 : i32
    %c0_i32_0 = arith.constant 0 : i32
    %c0_i32_1 = arith.constant 0 : i32
    return %c0_i32, %c0_i32_0 : i32, i32
  }
  func.func @transform_12(%arg0: i32) -> (i32, i32) {
    %c0_i32 = arith.constant 0 : i32
    %c0_i32_0 = arith.constant 0 : i32
    %c0_i32_1 = arith.constant 0 : i32
    return %c0_i32, %c0_i32_0 : i32, i32
  }
  func.func @transform_13(%arg0: i32) -> (i32, i32) {
    %c0_i32 = arith.constant 0 : i32
    %c0_i32_0 = arith.constant 0 : i32
    %c0_i32_1 = arith.constant 0 : i32
    return %c0_i32, %c0_i32_0 : i32, i32
  }
  func.func @transform_14(%arg0: i32) -> (i32, i32, i32) {
    %c0_i32 = arith.constant 0 : i32
    %c0_i32_0 = arith.constant 0 : i32
    %c0_i32_1 = arith.constant 0 : i32
    return %arg0, %c0_i32, %c0_i32_0 : i32, i32, i32
  }
}

module attributes {stable_mosaic.version = 11 : i64} {
  func.func @_lse_kernel(%arg0: i32, %arg1: i32, %arg2: memref<128x32xbf16, #tpu.memory_space<vmem>>, %arg3: memref<256x32xbf16, #tpu.memory_space<vmem>>, %arg4: memref<256x1xf32, #tpu.memory_space<vmem>>, %arg5: memref<1x1x128xf32, #tpu.memory_space<vmem>>, %arg6: memref<1x128xf32, #tpu.memory_space<vmem>>, %arg7: memref<1x128xf32, #tpu.memory_space<vmem>>) attributes {dimension_semantics = [#tpu.dimension_semantics<parallel>, #tpu.dimension_semantics<arbitrary>], iteration_bounds = array<i64: 1, 1>, scalar_prefetch = 0 : i64, scratch_operands = 2 : i64, tpu.core_type = #tpu.core_type<tc>, window_params = [{transform_indices = @transform_0, window_bounds = array<i64: 128, 32>}, {transform_indices = @transform_1, window_bounds = array<i64: 256, 32>}, {transform_indices = @transform_2, window_bounds = array<i64: 256, 1>}, {transform_indices = @transform_3, window_bounds = array<i64: 1, 1, 128>}]} {
    %c0_i32 = arith.constant 0 : i32
    %0 = arith.cmpi eq, %arg1, %c0_i32 : i32
    %1 = arith.extui %0 : i1 to i32
    %c0_i32_0 = arith.constant 0 : i32
    %2 = arith.cmpi ne, %1, %c0_i32_0 : i32
    scf.if %2 {
      %cst_20 = arith.constant 0xFF800000 : f32
      %29 = vector.broadcast %cst_20 : f32 to vector<1x128xf32>
      %c0_21 = arith.constant 0 : index
      %c0_22 = arith.constant 0 : index
      %30 = vector.load %arg6[%c0_21, %c0_22] : memref<1x128xf32, #tpu.memory_space<vmem>>, vector<1x128xf32>
      tpu.vector_store %arg6[%c0_21, %c0_22], %29 {strides = array<i32>} : memref<1x128xf32, #tpu.memory_space<vmem>>, vector<1x128xf32>,
      %cst_23 = arith.constant 0.000000e+00 : f32
      %31 = vector.broadcast %cst_23 : f32 to vector<1x128xf32>
      %c0_24 = arith.constant 0 : index
      %c0_25 = arith.constant 0 : index
      %32 = vector.load %arg7[%c0_24, %c0_25] : memref<1x128xf32, #tpu.memory_space<vmem>>, vector<1x128xf32>
      tpu.vector_store %arg7[%c0_24, %c0_25], %31 {strides = array<i32>} : memref<1x128xf32, #tpu.memory_space<vmem>>, vector<1x128xf32>,
    } else {
    }
    %c0 = arith.constant 0 : index
    %c0_1 = arith.constant 0 : index
    %3 = vector.load %arg3[%c0, %c0_1] : memref<256x32xbf16, #tpu.memory_space<vmem>>, vector<256x32xbf16>
    %c0_2 = arith.constant 0 : index
    %c0_3 = arith.constant 0 : index
    %4 = vector.load %arg2[%c0_2, %c0_3] : memref<128x32xbf16, #tpu.memory_space<vmem>>, vector<128x32xbf16>
    %cst = arith.constant dense<0.000000e+00> : vector<256x128xf32>
    %5 = tpu.matmul %3, %4, %cst {dimension_numbers = #tpu.dot_dimension_numbers<[1], [1], [0], [0], [0, 0, 1, 0], [], []>} : vector<256x32xbf16>, vector<128x32xbf16>, vector<256x128xf32> -> vector<256x128xf32>
    %c0_4 = arith.constant 0 : index
    %c0_5 = arith.constant 0 : index
    %6 = vector.load %arg4[%c0_4, %c0_5] : memref<256x1xf32, #tpu.memory_space<vmem>>, vector<256x1xf32>
    %7 = vector.broadcast %6 : vector<256x1xf32> to vector<256x128xf32>
    %8 = arith.addf %5, %7 : vector<256x128xf32>
    %c0_6 = arith.constant 0 : index
    %c0_7 = arith.constant 0 : index
    %9 = vector.load %arg6[%c0_6, %c0_7] : memref<1x128xf32, #tpu.memory_space<vmem>>, vector<1x128xf32>
    %cst_8 = arith.constant dense<0xFF800000> : vector<128xf32>
    %10 = vector.multi_reduction <maximumf>, %8, %cst_8 [0] : vector<256x128xf32> to vector<128xf32>
    %11 = vector.shape_cast %10 : vector<128xf32> to vector<1x128xf32>
    %12 = arith.maximumf %9, %11 : vector<1x128xf32>
    %c0_9 = arith.constant 0 : index
    %c0_10 = arith.constant 0 : index
    %13 = vector.load %arg6[%c0_9, %c0_10] : memref<1x128xf32, #tpu.memory_space<vmem>>, vector<1x128xf32>
    %14 = arith.subf %13, %12 : vector<1x128xf32>
    %15 = math.exp %14 : vector<1x128xf32>
    %c0_11 = arith.constant 0 : index
    %c0_12 = arith.constant 0 : index
    %16 = vector.load %arg7[%c0_11, %c0_12] : memref<1x128xf32, #tpu.memory_space<vmem>>, vector<1x128xf32>
    %17 = arith.mulf %15, %16 : vector<1x128xf32>
    %18 = vector.broadcast %12 : vector<1x128xf32> to vector<256x128xf32>
    %19 = arith.subf %8, %18 : vector<256x128xf32>
    %20 = math.exp %19 : vector<256x128xf32>
    %cst_13 = arith.constant dense<0.000000e+00> : vector<128xf32>
    %21 = vector.multi_reduction <add>, %20, %cst_13 [0] : vector<256x128xf32> to vector<128xf32>
    %22 = vector.shape_cast %21 : vector<128xf32> to vector<1x128xf32>
    %23 = arith.addf %17, %22 : vector<1x128xf32>
    %c0_14 = arith.constant 0 : index
    %c0_15 = arith.constant 0 : index
    %24 = vector.load %arg7[%c0_14, %c0_15] : memref<1x128xf32, #tpu.memory_space<vmem>>, vector<1x128xf32>
    tpu.vector_store %arg7[%c0_14, %c0_15], %23 {strides = array<i32>} : memref<1x128xf32, #tpu.memory_space<vmem>>, vector<1x128xf32>,
    %c0_16 = arith.constant 0 : index
    %c0_17 = arith.constant 0 : index
    %25 = vector.load %arg6[%c0_16, %c0_17] : memref<1x128xf32, #tpu.memory_space<vmem>>, vector<1x128xf32>
    tpu.vector_store %arg6[%c0_16, %c0_17], %12 {strides = array<i32>} : memref<1x128xf32, #tpu.memory_space<vmem>>, vector<1x128xf32>,
    %c0_i32_18 = arith.constant 0 : i32
    %26 = arith.cmpi eq, %arg1, %c0_i32_18 : i32
    %27 = arith.extui %26 : i1 to i32
    %c0_i32_19 = arith.constant 0 : i32
    %28 = arith.cmpi ne, %27, %c0_i32_19 : i32
    scf.if %28 {
      %c0_20 = arith.constant 0 : index
      %c0_21 = arith.constant 0 : index
      %29 = vector.load %arg6[%c0_20, %c0_21] : memref<1x128xf32, #tpu.memory_space<vmem>>, vector<1x128xf32>
      %c0_22 = arith.constant 0 : index
      %c0_23 = arith.constant 0 : index
      %30 = vector.load %arg7[%c0_22, %c0_23] : memref<1x128xf32, #tpu.memory_space<vmem>>, vector<1x128xf32>
      %31 = math.log %30 : vector<1x128xf32>
      %32 = arith.addf %29, %31 : vector<1x128xf32>
      %c0_24 = arith.constant 0 : index
      %c0_25 = arith.constant 0 : index
      %c0_26 = arith.constant 0 : index
      %33 = vector.load %arg5[%c0_24, %c0_25, %c0_26] : memref<1x1x128xf32, #tpu.memory_space<vmem>>, vector<1x1x128xf32>
      %34 = vector.shape_cast %33 : vector<1x1x128xf32> to vector<1x128xf32>
      %35 = vector.shape_cast %32 : vector<1x128xf32> to vector<1x1x128xf32>
      tpu.vector_store %arg5[%c0_24, %c0_25, %c0_26], %35 {strides = array<i32>} : memref<1x1x128xf32, #tpu.memory_space<vmem>>, vector<1x1x128xf32>,
    } else {
    }
    return
  }
  func.func @transform_0(%arg0: i32, %arg1: i32) -> (i32, i32) {
    %c0_i32 = arith.constant 0 : i32
    %c0_i32_0 = arith.constant 0 : i32
    return %arg0, %c0_i32 : i32, i32
  }
  func.func @transform_1(%arg0: i32, %arg1: i32) -> (i32, i32) {
    %c0_i32 = arith.constant 0 : i32
    %c0_i32_0 = arith.constant 0 : i32
    return %arg1, %c0_i32 : i32, i32
  }
  func.func @transform_2(%arg0: i32, %arg1: i32) -> (i32, i32) {
    %c0_i32 = arith.constant 0 : i32
    %c0_i32_0 = arith.constant 0 : i32
    return %arg1, %c0_i32 : i32, i32
  }
  func.func @transform_3(%arg0: i32, %arg1: i32) -> (i32, i32, i32) {
    %c0_i32 = arith.constant 0 : i32
    %c0_i32_0 = arith.constant 0 : i32
    %c0_i32_1 = arith.constant 0 : i32
    return %arg0, %c0_i32, %c0_i32_0 : i32, i32, i32
  }
}

</mosaic_0001>

<bundles_post_ra>
// kernel: tpu_custom_call.1
= control target key start
LH: loop header
LB: loop body
LE: loop exit
PB: predicated region body
PF: predicated region fallthrough
CT: control target
= control target key end

     0   :  { %6 = vsyncpa [#allocation3], 0  ;;  %s115_s0 = inlined_call_operand.hbm [shape: f32[8,128], index: 0, kind: input, shape index: {}]   ;;  %s116_s1 = inlined_call_operand.hbm [shape: f32[8,128], index: 1, kind: output, shape index: {}]  }
   0x1   :  { %7 = vsyncpa [#allocation4], 0  ;;  %s13_s8 = sshll.u32 %s115_s0, 4  ;;  %s97_s9 = smov [#allocation2]   ;;  %s14_s8 = int_to_ptr.hbm [resolvable:$true] %s13_s8 }
   0x2   :  { %s15_s10 = sshll.u32 %s97_s9, 4  ;;  %s16_s10 = int_to_ptr.vmem [resolvable:$true] %s15_s10 }
   0x3   :  { %18 = dma.hbm_to_vmem [thread:$0]  %s14_s8, 128, %s16_s10, [#allocation3]  }
   0x4   :  { %93 = dma.done.wait [#allocation3], 128  }
   0x5   :  { %94 = vsyncadd [#allocation3], 4294967168  ;;  %s98_s11 = smov [#allocation5]   ;;  %s33_s15 = sshll.u32 %s116_s1, 4  ;;  %v23_v0 = vld [vmem:[#allocation2] sm:$0xff]  ;;  %s34_s15 = int_to_ptr.hbm [resolvable:$true] %s33_s15 }
   0x6   :  { %s31_s12 = sshll.u32 %s98_s11, 4  ;;  %v24_v1 = vadd.f32 1.0, %v23_v0  ;;  %s32_s12 = int_to_ptr.vmem [resolvable:$true] %s31_s12 }
   0x8   :  { %25 = vst [vmem:[#allocation5] sm:$0xff] %v24_v1 }
   0x9   :  { %36 = dma.vmem_to_hbm [thread:$0]  %s32_s12, 128, %s34_s15, [#allocation4]  }
   0xa   :  { %95 = dma.done.wait [#allocation4], 128  }
   0xb   :  { %96 = vsyncadd [#allocation4], 4294967168 }
   0xc   :  { %41 = vsyncpa [#allocation3], 1 }
   0xd   :  { %42 = vsyncpa [#allocation4], 1 }

// kernel: blur_fnetar_forward.3
= control target key start
LH: loop header
LB: loop body
LE: loop exit
PB: predicated region body
PF: predicated region fallthrough
CT: control target
= control target key end

     0   :  { %vm63_vm0 = vcmask 1043456   ;;  %vm59_vm1 = vcmask 64512   ;;  %vm163_vm2 = vcmask 261120   ;;  %v533_v40 = vmov 32.0   ;;  %s702_s1 = inlined_call_operand.vmem [shape: bf16[2,8,32], index: 1, kind: input, shape index: {}]   ;;  %s703_s0 = inlined_call_operand.vmem [shape: bf16[2,8,32], index: 0, kind: input, shape index: {}]   ;;  %s704_s3 = inlined_call_operand.vmem [shape: bf16[16,8], index: 3, kind: input, shape index: {}]   ;;  %s705_s2 = inlined_call_operand.vmem [shape: bf16[16,8], index: 2, kind: input, shape index: {}]   ;;  %s706_s4 = inlined_call_operand.vmem [shape: bf16[32,32], index: 4, kind: input, shape index: {}]   ;;  %s707_s5 = inlined_call_operand.vmem [shape: bf16[32,32], index: 5, kind: input, shape index: {}]   ;;  %s708_s6 = inlined_call_operand.vmem [shape: f32[1,32], index: 6, kind: input, shape index: {}]   ;;  %s709_s7 = inlined_call_operand.vmem [shape: f32[1,32], index: 7, kind: input, shape index: {}]   ;;  %s710_s9 = inlined_call_operand.vmem [shape: f32[1,64], index: 9, kind: input, shape index: {}]   ;;  %s711_s8 = inlined_call_operand.vmem [shape: bf16[32,64], index: 8, kind: input, shape index: {}]   ;;  %s712_s10 = inlined_call_operand.vmem [shape: bf16[64,32], index: 10, kind: input, shape index: {}]   ;;  %s713_s11 = inlined_call_operand.vmem [shape: f32[1,32], index: 11, kind: input, shape index: {}]   ;;  %s714_s12 = inlined_call_operand.vmem [shape: f32[1,32], index: 12, kind: input, shape index: {}]   ;;  %s715_s13 = inlined_call_operand.vmem [shape: f32[1,32], index: 13, kind: input, shape index: {}]   ;;  %s716_s14 = inlined_call_operand.vmem [shape: bf16[2,8,32], index: 14, kind: output, shape index: {}]  }
   0x1   :  { %v52_v0 = vld [vmem:[%s702_s1] sm:$0xf]  ;;  %v455_v2 = vld [vmem:[%s702_s1 + $0x4] sm:$0xf]  ;;  %v507_v10 = vld [vmem:[%s706_s4 + $0x8] sm:$0xff]  ;;  %523 = vrcp.f32 %v533_v40  ;;  %vm359_vm10 = vcmask 523264  }
   0x2   :  { %v53_v1 = vld [vmem:[%s703_s0] sm:$0xf]  ;;  %v65_v3 = vsel %vm63_vm0, %v52_v0, 0  ;;  %v112_v5 = vsel %vm63_vm0, %v455_v2, 0  ;;  %v456_v6 = vld [vmem:[%s703_s0 + $0x4] sm:$0xf]  ;;  %v106_v29 = vunpack.c.l.bf16 %v52_v0  ;;  %v145_v34 = vunpack.c.l.bf16 %v455_v2 }
   0x3   :  { %v90_v4 = vsel %vm63_vm0, %v53_v1, 0  ;;  %v505_v7 = vld [vmem:[%s704_s3] sm:$0xff]  ;;  %74 = vmatpush.bf16.msra.mxu0 %v65_v3  ;;  %v129_v8 = vsel %vm63_vm0, %v456_v6, 0  ;;  %121 = vmatpush.bf16.msra.mxu2 %v112_v5  ;;  %v509_v11 = vld [vmem:[%s707_s5 + $0x8] sm:$0xff]  ;;  %v515_v62 = vld [vmem:[%s712_s10 + $0x18] sm:$0xff]  ;;  %vm436_vm15 = vcmask 257024  }
   0x4   :  { %99 = vmatpush.bf16.msra.mxu1 %v90_v4  ;;  %v504_v9 = vld [vmem:[%s705_s2] sm:$0xff]  ;;  %138 = vmatpush.bf16.msra.mxu3 %v129_v8  ;;  %v511_v57 = vld [vmem:[%s711_s8 + $0x8] sm:$0xff] }
   0x5   :  { %v506_v12 = vld [vmem:[%s706_s4] sm:$0xff] }
   0x6   :  { %449 = vmatmul.msk.bf16.vlgmr.msra.gmra.mxu0 %vm59_vm1, %v505_v7  ;;  %457 = vmatmul.msk.bf16.vlgmr.msra.gmra.mxu2 %vm59_vm1, %v505_v7  ;;  %v508_v13 = vld [vmem:[%s707_s5] sm:$0xff] }
   0x7   :  { %454 = vmatmul.msk.bf16.vlgmr.msra.gmra.mxu1 %vm59_vm1, %v504_v9  ;;  %458 = vmatmul.msk.bf16.vlgmr.msra.gmra.mxu3 %vm59_vm1, %v504_v9  ;;  %v524_v41 = vpop.eup %523  ;;  %v510_v59 = vld [vmem:[%s711_s8] sm:$0xff] }
   0x8   :  { %173 = vmatpush.bf16.msrb.mxu0 %v507_v10  ;;  %207 = vmatpush.bf16.msrb.mxu1 %v509_v11  ;;  %v228_v42 = vmul.f32 32.0, %v524_v41  ;;  %vm232_vm3 = vweird.f32 %v524_v41 }
   0x9   :  { %312 = vmatpush.bf16.msrb.mxu2 %v511_v57  ;;  %367 = vmatpush.bf16.msrb.mxu3 %v515_v62 }
   0xa   :  { %v229_v43 = vsub.f32 1.0, %v228_v42 }
   0xc   :  { %174 = vmatpush.bf16.msrb.mxu0 %v506_v12  ;;  %208 = vmatpush.bf16.msrb.mxu1 %v508_v13  ;;  %v230_v44 = vmul.f32 %v524_v41, %v229_v43 }
   0xd   :  { %313 = vmatpush.bf16.msrb.mxu2 %v510_v59 }
   0xe   :  { %v231_v45 = vadd.f32 %v524_v41, %v230_v44 }
  0x10   :  { %v643_v46 = vsel %vm232_vm3, %v524_v41, %v231_v45 }
  0x83   :  { %v76_v14 = vpop.f32.mrf.mxu0 }
  0x84   :  { %v101_v15 = vpop.f32.mrf.mxu1 }
  0x85   :  { %v102_v16 = vadd.f32 %v101_v15, %v76_v14  ;;  %v517_v15 = vld [vmem:[%s708_s6] ss:$0 sm:$0xff] }
  0x89   :  { %v123_v17 = vpop.f32.mrf.mxu2 }
  0x8a   :  { %v140_v18 = vpop.f32.mrf.mxu3 }
  0x8b   :  { %v141_v19 = vadd.f32 %v140_v18, %v123_v17  ;;  %v78_v21 = vpop.f32.mrf.mxu0 }
  0x8c   :  { %v103_v22 = vpop.f32.mrf.mxu1 }
  0x8d   :  { %v146_v20 = vpack.c.bf16 %v141_v19, %v102_v16  ;;  %v104_v25 = vadd.f32 %v103_v22, %v78_v21 }
  0x8f   :  { %467 = vmatmul.msk.bf16.vlgmr.msrb.gmra.mxu0 %vm163_vm2, %v146_v20  ;;  %v518_v20 = vld [vmem:[%s709_s7] ss:$0 sm:$0xff] }
  0x91   :  { %v125_v23 = vpop.f32.mrf.mxu2 }
  0x92   :  { %v142_v24 = vpop.f32.mrf.mxu3 }
  0x93   :  { %v143_v26 = vadd.f32 %v142_v24, %v125_v23 }
  0x95   :  { %v181_v27 = vpack.c.bf16 %v143_v26, %v104_v25  ;;  %v514_v25 = vld [vmem:[%s712_s10 + $0x10] sm:$0xff]  ;;  %v513_v26 = vld [vmem:[%s712_s10 + $0x8] sm:$0xff] }
  0x96   :  { %368 = vmatpush.bf16.msrb.mxu3 %v514_v25 }
  0x97   :  { %476 = vmatmul.msk.bf16.vlgmr.msrb.gmra.mxu1 %vm163_vm2, %v181_v27  ;;  %v512_v27 = vld [vmem:[%s712_s10] sm:$0xff] }
  0x9a   :  { %369 = vmatpush.bf16.msrb.mxu3 %v513_v26 }
  0x9e   :  { %370 = vmatpush.bf16.msrb.mxu3 %v512_v27 }
 0x10c   :  { %v176_v28 = vpop.f32.mrf.mxu0 }
 0x114   :  { %v210_v30 = vpop.f32.mrf.mxu1  ;;  %v178_v35 = vpop.f32.mrf.mxu0 }
 0x115   :  { %v215_v31 = vsub.f32 %v176_v28, %v210_v30 }
 0x117   :  { %v217_v32 = vadd.f32 %v215_v31, %v106_v29  ;;  %v519_v29 = vld [vmem:[%s710_s9] ss:$0 sm:$0xff] }
 0x119   :  { %v221_v33 = vsel %vm163_vm2, %v217_v32, 0.0 }
 0x11a   :  { %222 = vadd.xlane.f32.xlu0 %v221_v33 }
 0x11c   :  { %v212_v36 = vpop.f32.mrf.mxu1 }
 0x11d   :  { %v216_v37 = vsub.f32 %v178_v35, %v212_v36  ;;  %v520_v36 = vld [vmem:[%s713_s11] ss:$0 sm:$0xff] }
 0x11f   :  { %v218_v38 = vadd.f32 %v216_v37, %v145_v34 }
 0x121   :  { %v224_v39 = vsel %vm163_vm2, %v218_v38, 0.0 }
 0x122   :  { %225 = vadd.xlane.f32.xlu0 %v224_v39 }
 0x18d   :  { %v223_v47 = vpop.xlane.xlu0 %222 }
 0x18e   :  { %v234_v48 = vmul.f32 %v643_v46, %v223_v47 }
 0x190   :  { %v236_v49 = vsub.f32 %v217_v32, %v234_v48 }
 0x192   :  { %v238_v50 = vmul.f32 %v236_v49, %v236_v49 }
 0x194   :  { %v240_v51 = vsel %vm163_vm2, %v238_v50, 0.0 }
 0x195   :  { %241 = vadd.xlane.f32.xlu1 %v240_v51  ;;  %v226_v52 = vpop.xlane.xlu0 %225 }
 0x196   :  { %v235_v53 = vmul.f32 %v643_v46, %v226_v52 }
 0x198   :  { %v237_v54 = vsub.f32 %v218_v38, %v235_v53 }
 0x19a   :  { %v239_v55 = vmul.f32 %v237_v54, %v237_v54 }
 0x19c   :  { %v243_v56 = vsel %vm163_vm2, %v239_v55, 0.0 }
 0x19d   :  { %244 = vadd.xlane.f32.xlu1 %v243_v56 }
 0x208   :  { %v242_v58 = vpop.xlane.xlu1 %241 }
 0x209   :  { %v246_v60 = vmul.f32 %v242_v58, %v643_v46 }
 0x20b   :  { %v248_v61 = vadd.f32 1e-05, %v246_v60 }
 0x20d   :  { %525 = vrsqrt.f32 %v248_v61  ;;  %vm256_vm5 = vweird.f32 %v248_v61 }
 0x210   :  { %v245_v63 = vpop.xlane.xlu1 %244 }
 0x211   :  { %v247_v0 = vmul.f32 %v245_v63, %v643_v46 }
 0x213   :  { %v526_v1 = vpop.eup %525  ;;  %v249_v2 = vadd.f32 1e-05, %v247_v0 }
 0x214   :  { %v251_v3 = vmul.f32 %v526_v1, %v248_v61  ;;  %vm257_vm4 = vweird.f32 %v526_v1 }
 0x215   :  { %527 = vrsqrt.f32 %v249_v2  ;;  %vm258_vm6 = vmor %vm256_vm5, %vm257_vm4  ;;  %vm266_vm8 = vweird.f32 %v249_v2 }
 0x216   :  { %v252_v4 = vmul.f32 %v526_v1, %v251_v3 }
 0x218   :  { %v253_v5 = vmul.f32 0.5, %v252_v4 }
 0x21a   :  { %v254_v6 = vsub.f32 1.5, %v253_v5 }
 0x21b   :  { %v528_v7 = vpop.eup %527 }
 0x21c   :  { %v255_v8 = vmul.f32 %v526_v1, %v254_v6  ;;  %v261_v9 = vmul.f32 %v528_v7, %v249_v2  ;;  %vm267_vm7 = vweird.f32 %v528_v7  ;;  %v521_v6 = vld [vmem:[%s714_s12] ss:$0 sm:$0xff] }
 0x21d   :  { %vm268_vm9 = vmor %vm266_vm8, %vm267_vm7 }
 0x21e   :  { %v262_v10 = vmul.f32 %v528_v7, %v261_v9  ;;  %v259_v11 = vsel %vm258_vm6, %v526_v1, %v255_v8 }
 0x21f   :  { %v270_v14 = vmul.f32 %v259_v11, %v236_v49 }
 0x220   :  { %v263_v12 = vmul.f32 0.5, %v262_v10 }
 0x221   :  { %v275_v19 = vmul.f32 %v517_v15, %v270_v14 }
 0x222   :  { %v264_v13 = vsub.f32 1.5, %v263_v12 }
 0x223   :  { %v280_v22 = vadd.f32 %v518_v20, %v275_v19 }
 0x224   :  { %v265_v16 = vmul.f32 %v528_v7, %v264_v13 }
 0x226   :  { %v269_v17 = vsel %vm268_vm9, %v528_v7, %v265_v16 }
 0x227   :  { %v271_v18 = vmul.f32 %v269_v17, %v237_v54 }
 0x229   :  { %v276_v21 = vmul.f32 %v517_v15, %v271_v18 }
 0x22b   :  { %v281_v23 = vadd.f32 %v518_v20, %v276_v21 }
 0x22d   :  { %v282_v24 = vpack.c.bf16 %v281_v23, %v280_v22 }
 0x22f   :  { %485 = vmatmul.msk.bf16.vlgmr.msrb.gmra.mxu2 %vm163_vm2, %v282_v24 }
 0x2b2   :  { %v315_v28 = vpop.f32.mrf.mxu2 }
 0x2b3   :  { %v316_v30 = vadd.f32 %v519_v29, %v315_v28 }
 0x2b5   :  { %v320_v33 = vmax.f32 %v316_v30, 0.0 }
 0x2ba   :  { %v317_v31 = vpop.f32.mrf.mxu2 }
 0x2bb   :  { %v318_v32 = vadd.f32 %v519_v29, %v317_v31 }
 0x2bd   :  { %v321_v34 = vmax.f32 %v318_v32, 0.0 }
 0x2bf   :  { %v322_v35 = vpack.c.bf16 %v321_v34, %v320_v33 }
 0x2c1   :  { %502 = vmatmul.msk.bf16.vlgmr.msrb.gmra.mxu3 %vm359_vm10, %v322_v35 }
 0x344   :  { %v372_v37 = vpop.f32.mrf.mxu3 }
 0x345   :  { %v373_v38 = vadd.f32 %v520_v36, %v372_v37 }
 0x347   :  { %v377_v39 = vadd.f32 %v373_v38, %v280_v22 }
 0x349   :  { %v381_v40 = vsel %vm163_vm2, %v377_v39, 0.0 }
 0x34a   :  { %382 = vadd.xlane.f32.xlu2 %v381_v40 }
 0x34c   :  { %v374_v41 = vpop.f32.mrf.mxu3 }
 0x34d   :  { %v375_v42 = vadd.f32 %v520_v36, %v374_v41 }
 0x34f   :  { %v378_v43 = vadd.f32 %v375_v42, %v281_v23 }
 0x351   :  { %v384_v44 = vsel %vm163_vm2, %v378_v43, 0.0 }
 0x352   :  { %385 = vadd.xlane.f32.xlu2 %v384_v44 }
 0x3bd   :  { %v383_v45 = vpop.xlane.xlu2 %382 }
 0x3be   :  { %v387_v47 = vmul.f32 %v383_v45, %v643_v46 }
 0x3c0   :  { %v389_v48 = vsub.f32 %v377_v39, %v387_v47 }
 0x3c2   :  { %v391_v49 = vmul.f32 %v389_v48, %v389_v48 }
 0x3c4   :  { %v393_v50 = vsel %vm163_vm2, %v391_v49, 0.0 }
 0x3c5   :  { %394 = vadd.xlane.f32.xlu0 %v393_v50  ;;  %v386_v51 = vpop.xlane.xlu2 %385 }
 0x3c6   :  { %v388_v52 = vmul.f32 %v386_v51, %v643_v46 }
 0x3c8   :  { %v390_v53 = vsub.f32 %v378_v43, %v388_v52 }
 0x3ca   :  { %v392_v54 = vmul.f32 %v390_v53, %v390_v53 }
 0x3cc   :  { %v396_v55 = vsel %vm163_vm2, %v392_v54, 0.0 }
 0x3cd   :  { %397 = vadd.xlane.f32.xlu1 %v396_v55 }
 0x438   :  { %v395_v56 = vpop.xlane.xlu0 %394 }
 0x439   :  { %v399_v57 = vmul.f32 %v395_v56, %v643_v46 }
 0x43b   :  { %v401_v58 = vadd.f32 1e-05, %v399_v57 }
 0x43d   :  { %529 = vrsqrt.f32 %v401_v58  ;;  %vm409_vm12 = vweird.f32 %v401_v58 }
 0x440   :  { %v398_v59 = vpop.xlane.xlu1 %397 }
 0x441   :  { %v400_v60 = vmul.f32 %v398_v59, %v643_v46  ;;  %v522_v46 = vld [vmem:[%s715_s13] ss:$0 sm:$0xff] }
 0x443   :  { %v530_v61 = vpop.eup %529  ;;  %v402_v62 = vadd.f32 1e-05, %v400_v60 }
 0x444   :  { %v404_v63 = vmul.f32 %v530_v61, %v401_v58  ;;  %vm410_vm11 = vweird.f32 %v530_v61 }
 0x445   :  { %531 = vrsqrt.f32 %v402_v62  ;;  %vm411_vm13 = vmor %vm409_vm12, %vm410_vm11  ;;  %vm419_vm0 = vweird.f32 %v402_v62 }
 0x446   :  { %v405_v0 = vmul.f32 %v530_v61, %v404_v63 }
 0x448   :  { %v406_v1 = vmul.f32 0.5, %v405_v0 }
 0x44a   :  { %v407_v2 = vsub.f32 1.5, %v406_v1 }
 0x44b   :  { %v532_v3 = vpop.eup %531 }
 0x44c   :  { %v408_v4 = vmul.f32 %v530_v61, %v407_v2  ;;  %v414_v5 = vmul.f32 %v532_v3, %v402_v62  ;;  %vm420_vm14 = vweird.f32 %v532_v3 }
 0x44d   :  { %vm421_vm1 = vmor %vm419_vm0, %vm420_vm14 }
 0x44e   :  { %v412_v7 = vsel %vm411_vm13, %v530_v61, %v408_v4  ;;  %v415_v8 = vmul.f32 %v532_v3, %v414_v5 }
 0x44f   :  { %v423_v9 = vmul.f32 %v412_v7, %v389_v48 }
 0x450   :  { %v416_v10 = vmul.f32 0.5, %v415_v8 }
 0x451   :  { %v428_v11 = vmul.f32 %v521_v6, %v423_v9 }
 0x452   :  { %v417_v12 = vsub.f32 1.5, %v416_v10 }
 0x453   :  { %v433_v13 = vadd.f32 %v522_v46, %v428_v11 }
 0x454   :  { %v418_v14 = vmul.f32 %v532_v3, %v417_v12 }
 0x455   :  { %v435_v15 = vpack.c.bf16 %v433_v13, %v433_v13 }
 0x456   :  { %v422_v16 = vsel %vm421_vm1, %v532_v3, %v418_v14 }
 0x457   :  { %437 = vst.msk [vmem:[%s716_s14] sm:$0xf] %vm436_vm15, %v435_v15  ;;  %v424_v17 = vmul.f32 %v422_v16, %v390_v53 }
 0x459   :  { %v429_v18 = vmul.f32 %v521_v6, %v424_v17 }
 0x45b   :  { %v434_v19 = vadd.f32 %v522_v46, %v429_v18 }
 0x45d   :  { %v438_v20 = vpack.c.bf16 %v434_v19, %v434_v19 }
 0x45f   :  { %503 = vst.msk [vmem:[%s716_s14 + $0x4] sm:$0xf] %vm436_vm15, %v438_v20 }

// kernel: blur_fnetar_forward.5
= control target key start
LH: loop header
LB: loop body
LE: loop exit
PB: predicated region body
PF: predicated region fallthrough
CT: control target
= control target key end

     0   :  { %vm380_vm0 = vcmask 261120   ;;  %v972_v0 = vmov 0   ;;  %s1457_s2 = inlined_call_operand.vmem [shape: f32[256,1], index: 2, kind: input, shape index: {}]   ;;  %s1458_s0 = inlined_call_operand.vmem [shape: bf16[128,32], index: 0, kind: input, shape index: {}]   ;;  %s1459_s1 = inlined_call_operand.vmem [shape: bf16[256,32], index: 1, kind: input, shape index: {}]   ;;  %s1460_s3 = inlined_call_operand.vmem [shape: f32[1,1,128], index: 3, kind: output, shape index: {}]  }
   0x1   :  { %902 = vset.pattern.permute.xlu1 %v972_v0  ;;  %901 = vset.pattern.permute.xlu0 %v972_v0  ;;  %v70_v1 = vld [vmem:[%s1457_s2 + $0x10] sm:$0xff]  ;;  %v68_v2 = vld [vmem:[%s1457_s2] sm:$0xff]  ;;  %v873_v3 = vld [vmem:[%s1458_s0 + $0x38] sm:$0xff] }
   0x2   :  { %112 = vperm.xlu1 %902, %v70_v1   ;;  %102 = vperm.xlu0 %901, %v68_v2   ;;  %v451_v4 = vsel %vm380_vm0, %v873_v3, 0  ;;  %v72_v5 = vld [vmem:[%s1457_s2 + $0x20] sm:$0xff]  ;;  %v872_v6 = vld [vmem:[%s1458_s0 + $0x30] sm:$0xff]  ;;  %v71_v7 = vld [vmem:[%s1457_s2 + $0x18] sm:$0xff] }
   0x3   :  { %903 = vset.pattern.permute.xlu2 %v972_v0  ;;  %453 = vmatpush.bf16.xpose.msra.mxu0 %v451_v4  ;;  %v69_v8 = vld [vmem:[%s1457_s2 + $0x8] sm:$0xff]  ;;  %v448_v9 = vsel %vm380_vm0, %v872_v6, 0  ;;  %v75_v12 = vld [vmem:[%s1457_s2 + $0x38] sm:$0xff]  ;;  %v74_v13 = vld [vmem:[%s1457_s2 + $0x30] sm:$0xff] }
   0x4   :  { %874 = vmatpush.bf16.xpose.msra.mxu1 %v451_v4  ;;  %875 = vmatpush.bf16.xpose.msra.mxu2 %v451_v4  ;;  %v73_v10 = vld [vmem:[%s1457_s2 + $0x28] sm:$0xff]  ;;  %v76_v15 = vld [vmem:[%s1457_s2 + $0x40] sm:$0xff]  ;;  %v78_v17 = vld [vmem:[%s1457_s2 + $0x50] sm:$0xff] }
   0x5   :  { %876 = vmatpush.bf16.xpose.msra.mxu3 %v451_v4  ;;  %122 = vperm.xlu2 %903, %v72_v5   ;;  %v871_v11 = vld [vmem:[%s1458_s0 + $0x28] sm:$0xff]  ;;  %v870_v16 = vld [vmem:[%s1458_s0 + $0x20] sm:$0xff]  ;;  %v79_v20 = vld [vmem:[%s1457_s2 + $0x58] sm:$0xff] }
   0x6   :  { %v445_v14 = vsel %vm380_vm0, %v871_v11, 0  ;;  %v77_v18 = vld [vmem:[%s1457_s2 + $0x48] sm:$0xff]  ;;  %v442_v19 = vsel %vm380_vm0, %v870_v16, 0  ;;  %v869_v21 = vld [vmem:[%s1458_s0 + $0x18] sm:$0xff]  ;;  %v80_v23 = vld [vmem:[%s1457_s2 + $0x60] sm:$0xff] }
   0x7   :  { %v81_v22 = vld [vmem:[%s1457_s2 + $0x68] sm:$0xff]  ;;  %v439_v24 = vsel %vm380_vm0, %v869_v21, 0  ;;  %v82_v25 = vld [vmem:[%s1457_s2 + $0x70] sm:$0xff]  ;;  %v84_v27 = vld [vmem:[%s1457_s2 + $0x80] sm:$0xff] }
   0x8   :  { %v868_v26 = vld [vmem:[%s1458_s0 + $0x10] sm:$0xff]  ;;  %v83_v28 = vld [vmem:[%s1457_s2 + $0x78] sm:$0xff]  ;;  %v85_v30 = vld [vmem:[%s1457_s2 + $0x88] sm:$0xff] }
   0x9   :  { %v436_v29 = vsel %vm380_vm0, %v868_v26, 0  ;;  %v867_v31 = vld [vmem:[%s1458_s0 + $0x8] sm:$0xff]  ;;  %v87_v32 = vld [vmem:[%s1457_s2 + $0x98] sm:$0xff]  ;;  %v86_v33 = vld [vmem:[%s1457_s2 + $0x90] sm:$0xff] }
   0xa   :  { %117 = vperm.xlu1 %902, %v71_v7   ;;  %107 = vperm.xlu0 %901, %v69_v8   ;;  %v433_v34 = vsel %vm380_vm0, %v867_v31, 0  ;;  %v88_v35 = vld [vmem:[%s1457_s2 + $0xa0] sm:$0xff]  ;;  %v90_v37 = vld [vmem:[%s1457_s2 + $0xb0] sm:$0xff]  ;;  %v89_v38 = vld [vmem:[%s1457_s2 + $0xa8] sm:$0xff] }
   0xb   :  { %454 = vmatpush.bf16.xpose.msra.mxu0 %v448_v9  ;;  %v866_v36 = vld [vmem:[%s1458_s0] sm:$0xff]  ;;  %v91_v40 = vld [vmem:[%s1457_s2 + $0xb8] sm:$0xff]  ;;  %v93_v41 = vld [vmem:[%s1457_s2 + $0xc8] sm:$0xff] }
   0xc   :  { %877 = vmatpush.bf16.xpose.msra.mxu1 %v448_v9  ;;  %878 = vmatpush.bf16.xpose.msra.mxu2 %v448_v9  ;;  %v430_v39 = vsel %vm380_vm0, %v866_v36, 0  ;;  %v92_v42 = vld [vmem:[%s1457_s2 + $0xc0] sm:$0xff]  ;;  %v94_v47 = vld [vmem:[%s1457_s2 + $0xd0] sm:$0xff]  ;;  %v95_v49 = vld [vmem:[%s1457_s2 + $0xd8] sm:$0xff] }
   0xd   :  { %879 = vmatpush.bf16.xpose.msra.mxu3 %v448_v9  ;;  %127 = vperm.xlu2 %903, %v73_v10   ;;  %v850_v43 = vld [vmem:[%s1459_s1] sm:$0xff]  ;;  %v97_v50 = vld [vmem:[%s1457_s2 + $0xe8] sm:$0xff]  ;;  %v99_v51 = vld [vmem:[%s1457_s2 + $0xf8] sm:$0xff] }
   0xe   :  { %v854_v44 = vld [vmem:[%s1459_s1 + $0x20] sm:$0xff]  ;;  %v98_v52 = vld [vmem:[%s1457_s2 + $0xf0] sm:$0xff]  ;;  %v851_v53 = vld [vmem:[%s1459_s1 + $0x8] sm:$0xff] }
   0xf   :  { %v858_v45 = vld [vmem:[%s1459_s1 + $0x40] sm:$0xff]  ;;  %v855_v54 = vld [vmem:[%s1459_s1 + $0x28] sm:$0xff]  ;;  %v852_v57 = vld [vmem:[%s1459_s1 + $0x10] sm:$0xff] }
  0x10   :  { %v862_v46 = vld [vmem:[%s1459_s1 + $0x60] sm:$0xff]  ;;  %v859_v55 = vld [vmem:[%s1459_s1 + $0x48] sm:$0xff]  ;;  %v856_v58 = vld [vmem:[%s1459_s1 + $0x30] sm:$0xff] }
  0x11   :  { %v96_v48 = vld [vmem:[%s1457_s2 + $0xe0] sm:$0xff]  ;;  %v863_v56 = vld [vmem:[%s1459_s1 + $0x68] sm:$0xff]  ;;  %v860_v59 = vld [vmem:[%s1459_s1 + $0x50] sm:$0xff] }
  0x12   :  { %137 = vperm.xlu1 %902, %v75_v12   ;;  %132 = vperm.xlu0 %901, %v74_v13   ;;  %v864_v60 = vld [vmem:[%s1459_s1 + $0x70] sm:$0xff]  ;;  %v853_v61 = vld [vmem:[%s1459_s1 + $0x18] sm:$0xff] }
  0x13   :  { %455 = vmatpush.bf16.xpose.msra.mxu0 %v445_v14  ;;  %v857_v62 = vld [vmem:[%s1459_s1 + $0x38] sm:$0xff] }
  0x14   :  { %880 = vmatpush.bf16.xpose.msra.mxu1 %v445_v14  ;;  %881 = vmatpush.bf16.xpose.msra.mxu2 %v445_v14  ;;  %v861_v63 = vld [vmem:[%s1459_s1 + $0x58] sm:$0xff] }
  0x15   :  { %882 = vmatpush.bf16.xpose.msra.mxu3 %v445_v14  ;;  %142 = vperm.xlu2 %903, %v76_v15   ;;  %v865_v0 = vld [vmem:[%s1459_s1 + $0x78] sm:$0xff] }
  0x1a   :  { %152 = vperm.xlu1 %902, %v78_v17   ;;  %147 = vperm.xlu0 %901, %v77_v18  }
  0x1b   :  { %456 = vmatpush.bf16.xpose.msra.mxu0 %v442_v19 }
  0x1c   :  { %883 = vmatpush.bf16.xpose.msra.mxu1 %v442_v19  ;;  %884 = vmatpush.bf16.xpose.msra.mxu2 %v442_v19 }
  0x1d   :  { %885 = vmatpush.bf16.xpose.msra.mxu3 %v442_v19  ;;  %157 = vperm.xlu2 %903, %v79_v20  }
  0x22   :  { %167 = vperm.xlu1 %902, %v81_v22   ;;  %162 = vperm.xlu0 %901, %v80_v23  }
  0x23   :  { %457 = vmatpush.bf16.xpose.msra.mxu0 %v439_v24 }
  0x24   :  { %886 = vmatpush.bf16.xpose.msra.mxu1 %v439_v24  ;;  %887 = vmatpush.bf16.xpose.msra.mxu2 %v439_v24 }
  0x25   :  { %888 = vmatpush.bf16.xpose.msra.mxu3 %v439_v24  ;;  %172 = vperm.xlu2 %903, %v82_v25  }
  0x2a   :  { %182 = vperm.xlu1 %902, %v84_v27   ;;  %177 = vperm.xlu0 %901, %v83_v28  }
  0x2b   :  { %458 = vmatpush.bf16.xpose.msra.mxu0 %v436_v29 }
  0x2c   :  { %889 = vmatpush.bf16.xpose.msra.mxu1 %v436_v29  ;;  %890 = vmatpush.bf16.xpose.msra.mxu2 %v436_v29 }
  0x2d   :  { %891 = vmatpush.bf16.xpose.msra.mxu3 %v436_v29  ;;  %187 = vperm.xlu2 %903, %v85_v30  }
  0x32   :  { %197 = vperm.xlu1 %902, %v87_v32   ;;  %192 = vperm.xlu0 %901, %v86_v33  }
  0x33   :  { %459 = vmatpush.bf16.xpose.msra.mxu0 %v433_v34 }
  0x34   :  { %892 = vmatpush.bf16.xpose.msra.mxu1 %v433_v34  ;;  %893 = vmatpush.bf16.xpose.msra.mxu2 %v433_v34 }
  0x35   :  { %894 = vmatpush.bf16.xpose.msra.mxu3 %v433_v34  ;;  %202 = vperm.xlu2 %903, %v88_v35  }
  0x3a   :  { %212 = vperm.xlu1 %902, %v90_v37   ;;  %207 = vperm.xlu0 %901, %v89_v38  }
  0x3b   :  { %460 = vmatpush.bf16.xpose.msra.mxu0 %v430_v39 }
  0x3c   :  { %895 = vmatpush.bf16.xpose.msra.mxu1 %v430_v39  ;;  %896 = vmatpush.bf16.xpose.msra.mxu2 %v430_v39 }
  0x3d   :  { %897 = vmatpush.bf16.xpose.msra.mxu3 %v430_v39  ;;  %217 = vperm.xlu2 %903, %v91_v40  }
  0x42   :  { %227 = vperm.xlu1 %902, %v93_v41   ;;  %222 = vperm.xlu0 %901, %v92_v42   ;;  %v973_v42 = vmov -inf  }
  0x43   :  { %834 = vmatmul.msk.bf16.vlgmr.msra.gmra.mxu0 %vm380_vm0, %v850_v43  ;;  %838 = vmatmul.msk.bf16.vlgmr.msra.gmra.mxu1 %vm380_vm0, %v854_v44  ;;  %18 = vst [vmem:[#allocation2] sm:$0x1] %v973_v42  ;;  %v974_v43 = vmov 0.0  }
  0x44   :  { %842 = vmatmul.msk.bf16.vlgmr.msra.gmra.mxu2 %vm380_vm0, %v858_v45  ;;  %846 = vmatmul.msk.bf16.vlgmr.msra.gmra.mxu3 %vm380_vm0, %v862_v46  ;;  %19 = vst [vmem:[#allocation3] sm:$0x1] %v974_v43 }
  0x45   :  { %232 = vperm.xlu2 %903, %v94_v47  }
  0x4a   :  { %242 = vperm.xlu1 %902, %v96_v48   ;;  %237 = vperm.xlu0 %901, %v95_v49  }
  0x4d   :  { %247 = vperm.xlu2 %903, %v97_v50  }
  0x52   :  { %257 = vperm.xlu1 %902, %v99_v51   ;;  %252 = vperm.xlu0 %901, %v98_v52  }
  0x53   :  { %835 = vmatmul.msk.bf16.gmra.mxu0 %vm380_vm0, %v851_v53  ;;  %839 = vmatmul.msk.bf16.gmra.mxu1 %vm380_vm0, %v855_v54 }
  0x54   :  { %843 = vmatmul.msk.bf16.gmra.mxu2 %vm380_vm0, %v859_v55  ;;  %847 = vmatmul.msk.bf16.gmra.mxu3 %vm380_vm0, %v863_v56 }
  0x5f   :  { %v123_v3 = vpop.permute.xlu2 %122 }
  0x63   :  { %836 = vmatmul.msk.bf16.gmra.mxu0 %vm380_vm0, %v852_v57  ;;  %840 = vmatmul.msk.bf16.gmra.mxu1 %vm380_vm0, %v856_v58 }
  0x64   :  { %844 = vmatmul.msk.bf16.gmra.mxu2 %vm380_vm0, %v860_v59  ;;  %848 = vmatmul.msk.bf16.gmra.mxu3 %vm380_vm0, %v864_v60 }
  0x67   :  { %v128_v6 = vpop.permute.xlu2 %127 }
  0x6f   :  { %v143_v9 = vpop.permute.xlu2 %142 }
  0x73   :  { %837 = vmatmul.msk.bf16.gmra.mxu0 %vm380_vm0, %v853_v61  ;;  %841 = vmatmul.msk.bf16.gmra.mxu1 %vm380_vm0, %v857_v62 }
  0x74   :  { %845 = vmatmul.msk.bf16.gmra.mxu2 %vm380_vm0, %v861_v63  ;;  %849 = vmatmul.msk.bf16.gmra.mxu3 %vm380_vm0, %v865_v0  ;;  %v1187_v1 = vpop.permute.xlu1 %112  ;;  %v103_v2 = vpop.permute.xlu0 %102 }
  0x77   :  { %v1193_v14 = vpop.permute.xlu2 %157 }
  0x7c   :  { %v1189_v4 = vpop.permute.xlu1 %117  ;;  %v108_v5 = vpop.permute.xlu0 %107 }
  0x7f   :  { %v173_v21 = vpop.permute.xlu2 %172 }
  0x84   :  { %v1191_v7 = vpop.permute.xlu1 %137  ;;  %v133_v8 = vpop.permute.xlu0 %132 }
  0x87   :  { %v188_v32 = vpop.permute.xlu2 %187 }
  0x8c   :  { %v153_v10 = vpop.permute.xlu1 %152  ;;  %v148_v11 = vpop.permute.xlu0 %147 }
  0x8f   :  { %v203_v39 = vpop.permute.xlu2 %202 }
  0x94   :  { %v168_v15 = vpop.permute.xlu1 %167  ;;  %v163_v16 = vpop.permute.xlu0 %162 }
  0x97   :  { %v218_v51 = vpop.permute.xlu2 %217 }
  0x9c   :  { %v183_v22 = vpop.permute.xlu1 %182  ;;  %v1199_v23 = vpop.permute.xlu0 %177 }
  0xa4   :  { %v1205_v33 = vpop.permute.xlu1 %197  ;;  %v193_v34 = vpop.permute.xlu0 %192 }
  0xac   :  { %v213_v40 = vpop.permute.xlu1 %212  ;;  %v208_v41 = vpop.permute.xlu0 %207 }
  0xb4   :  { %v228_v54 = vpop.permute.xlu1 %227  ;;  %v223_v55 = vpop.permute.xlu0 %222 }
  0xc0   :  { %v462_v12 = vpop.f32.mrf.mxu0  ;;  %v482_v13 = vpop.f32.mrf.mxu1 }
  0xc1   :  { %v1219_v52 = vadd.f32 %v462_v12, %v103_v2  ;;  %v1227_v62 = vadd.f32 %v482_v13, %v143_v9 }
  0xc7   :  { %v1195_v17 = vpop.f32.mrf.mxu2  ;;  %v1197_v18 = vpop.f32.mrf.mxu3 }
  0xc8   :  { %v464_v19 = vpop.f32.mrf.mxu0  ;;  %v484_v20 = vpop.f32.mrf.mxu1 }
  0xc9   :  { %v1215_v49 = vadd.f32 %v464_v19, %v108_v5  ;;  %v1223_v56 = vadd.f32 %v484_v20, %v148_v11  ;;  %v233_v19 = vpop.permute.xlu2 %232 }
  0xcf   :  { %v504_v24 = vpop.f32.mrf.mxu2  ;;  %v1201_v25 = vpop.f32.mrf.mxu3 }
  0xd0   :  { %v467_v26 = vpop.f32.mrf.mxu0  ;;  %v487_v27 = vpop.f32.mrf.mxu1 }
  0xd1   :  { %v1230_v63 = vadd.f32 %v467_v26, %v1187_v1  ;;  %v1253_v26 = vadd.f32 %v1195_v17, %v183_v22 }
  0xd7   :  { %v507_v28 = vpop.f32.mrf.mxu2  ;;  %v1203_v29 = vpop.f32.mrf.mxu3 }
  0xd8   :  { %v469_v30 = vpop.f32.mrf.mxu0  ;;  %v489_v31 = vpop.f32.mrf.mxu1 }
  0xd9   :  { %v1265_v43 = vadd.f32 %v489_v31, %v1193_v14  ;;  %v1283_v31 = vadd.f32 %v1201_v25, %v228_v54 }
  0xdf   :  { %v1207_v35 = vpop.f32.mrf.mxu2  ;;  %v1209_v36 = vpop.f32.mrf.mxu3 }
  0xe0   :  { %v472_v37 = vpop.f32.mrf.mxu0  ;;  %v492_v38 = vpop.f32.mrf.mxu1 }
  0xe1   :  { %v1217_v50 = vadd.f32 %v472_v37, %v123_v3  ;;  %v1235_v3 = vadd.f32 %v487_v27, %v153_v10  ;;  %v1242_v12 = vadd.f32 %v492_v38, %v163_v16  ;;  %v243_v37 = vpop.permute.xlu1 %242  ;;  %v1255_v38 = vadd.f32 %v507_v28, %v193_v34 }
  0xe3   :  { %v543_v57 = vmax.f32 %v1219_v52, %v1217_v50 }
  0xe5   :  { %v547_v5 = vmax.f32 %v543_v57, %v1227_v62  ;;  %v1293_v57 = vadd.f32 %v1197_v18, %v223_v55 }
  0xe7   :  { %v512_v44 = vpop.f32.mrf.mxu2  ;;  %v1211_v45 = vpop.f32.mrf.mxu3  ;;  %v551_v10 = vmax.f32 %v547_v5, %v1242_v12 }
  0xe8   :  { %v474_v46 = vpop.f32.mrf.mxu0  ;;  %v494_v47 = vpop.f32.mrf.mxu1 }
  0xe9   :  { %v1213_v48 = vadd.f32 %v474_v46, %v128_v6  ;;  %v1238_v6 = vadd.f32 %v494_v47, %v168_v15  ;;  %v555_v17 = vmax.f32 %v551_v10, %v1253_v26  ;;  %v258_v55 = vpop.permute.xlu1 %257 }
  0xeb   :  { %v544_v53 = vmax.f32 %v1215_v49, %v1213_v48 }
  0xed   :  { %v548_v0 = vmax.f32 %v544_v53, %v1223_v56 }
  0xef   :  { %v514_v58 = vpop.f32.mrf.mxu2  ;;  %v534_v59 = vpop.f32.mrf.mxu3  ;;  %v552_v9 = vmax.f32 %v548_v0, %v1238_v6 }
  0xf0   :  { %v477_v60 = vpop.f32.mrf.mxu0  ;;  %v497_v61 = vpop.f32.mrf.mxu1  ;;  %v1268_v22 = vadd.f32 %v514_v58, %v208_v41  ;;  %v1287_v41 = vadd.f32 %v1207_v35, %v1205_v33 }
  0xf1   :  { %v1233_v2 = vadd.f32 %v477_v60, %v133_v8  ;;  %v1245_v13 = vadd.f32 %v497_v61, %v173_v21  ;;  %v1248_v8 = vadd.f32 %v504_v24, %v188_v32  ;;  %v1258_v21 = vadd.f32 %v469_v30, %v1189_v4  ;;  %v238_v32 = vpop.permute.xlu0 %237  ;;  %v248_v35 = vpop.permute.xlu2 %247 }
  0xf2   :  { %v1273_v30 = vadd.f32 %v512_v44, %v203_v39  ;;  %v1303_v58 = vadd.f32 %v1209_v36, %v238_v32  ;;  %v1306_v0 = vadd.f32 %v534_v59, %v248_v35 }
  0xf3   :  { %v545_v11 = vmax.f32 %v1230_v63, %v1233_v2  ;;  %v556_v42 = vmax.f32 %v552_v9, %v1248_v8 }
  0xf4   :  { %v559_v53 = vmax.f32 %v555_v17, %v1273_v30 }
  0xf5   :  { %v549_v1 = vmax.f32 %v545_v11, %v1235_v3  ;;  %v560_v34 = vmax.f32 %v556_v42, %v1268_v22 }
  0xf6   :  { %v563_v61 = vmax.f32 %v559_v53, %v1293_v57 }
  0xf7   :  { %v553_v20 = vmax.f32 %v549_v1, %v1245_v13  ;;  %v517_v15 = vpop.f32.mrf.mxu2  ;;  %v537_v27 = vpop.f32.mrf.mxu3  ;;  %v564_v25 = vmax.f32 %v560_v34, %v1283_v31 }
  0xf8   :  { %v479_v16 = vpop.f32.mrf.mxu0  ;;  %v499_v46 = vpop.f32.mrf.mxu1 }
  0xf9   :  { %v1262_v24 = vadd.f32 %v479_v16, %v1191_v7  ;;  %v557_v28 = vmax.f32 %v553_v20, %v1255_v38  ;;  %v1276_v7 = vadd.f32 %v517_v15, %v213_v40  ;;  %v1279_v47 = vadd.f32 %v499_v46, %v1199_v23  ;;  %v253_v5 = vpop.permute.xlu0 %252 }
  0xfa   :  { %v1296_v23 = vadd.f32 %v1203_v29, %v233_v19  ;;  %v568_v11 = vmax.f32 %v564_v25, %v1306_v0  ;;  %v1314_v9 = vadd.f32 %v537_v27, %v253_v5  ;;  %v1322_v27 = vld [vmem:[#allocation2] sm:$0x1] }
  0xfb   :  { %v546_v4 = vmax.f32 %v1258_v21, %v1262_v24  ;;  %v561_v39 = vmax.f32 %v557_v28, %v1276_v7 }
  0xfd   :  { %v550_v14 = vmax.f32 %v546_v4, %v1265_v43  ;;  %v565_v18 = vmax.f32 %v561_v39, %v1296_v23 }
  0xff   :  { %v554_v44 = vmax.f32 %v550_v14, %v1279_v47  ;;  %v519_v40 = vpop.f32.mrf.mxu2  ;;  %v539_v60 = vpop.f32.mrf.mxu3  ;;  %v569_v19 = vmax.f32 %v565_v18, %v1314_v9 }
 0x100   :  { %v1299_v54 = vadd.f32 %v519_v40, %v218_v51  ;;  %v1311_v51 = vadd.f32 %v1211_v45, %v243_v37  ;;  %v1316_v36 = vadd.f32 %v539_v60, %v258_v55 }
 0x101   :  { %v558_v33 = vmax.f32 %v554_v44, %v1287_v41 }
 0x102   :  { %v567_v59 = vmax.f32 %v563_v61, %v1311_v51 }
 0x103   :  { %v562_v29 = vmax.f32 %v558_v33, %v1299_v54 }
 0x104   :  { %v571_v20 = vmax.f32 %v567_v59, %v568_v11 }
 0x105   :  { %v566_v1 = vmax.f32 %v562_v29, %v1303_v58 }
 0x107   :  { %v570_v10 = vmax.f32 %v566_v1, %v1316_v36 }
 0x109   :  { %v572_v15 = vmax.f32 %v569_v19, %v570_v10 }
 0x10b   :  { %v573_v16 = vmax.f32 %v571_v20, %v572_v15 }
 0x10d   :  { %v574_v42 = vrot.slane %v573_v16, 4 }
 0x10f   :  { %v575_v45 = vmax.f32 %v573_v16, %v574_v42 }
 0x111   :  { %v576_v37 = vrot.slane %v575_v45, 2 }
 0x113   :  { %v577_v32 = vmax.f32 %v575_v45, %v576_v37 }
 0x115   :  { %v578_v46 = vrot.slane %v577_v32, 1 }
 0x117   :  { %v579_v17 = vmax.f32 %v577_v32, %v578_v46 }
 0x119   :  { %v1325_v28 = vmax.f32 %v1322_v27, %v579_v17 }
 0x11b   :  { %v581_v4 = vsub.f32 %v1322_v27, %v1325_v28  ;;  %v1330_v34 = vperm.slane %v1325_v28, 0  ;;  %724 = vst [vmem:[#allocation2] sm:$0x1] %v1325_v28 }
 0x11d   :  { %v589_v14 = vsub.f32 %v1219_v52, %v1330_v34  ;;  %v591_v53 = vsub.f32 %v1230_v63, %v1330_v34  ;;  %v590_v39 = vsub.f32 %v1215_v49, %v1330_v34  ;;  %v592_v44 = vsub.f32 %v1258_v21, %v1330_v34 }
 0x11e   :  { %v603_v40 = vsub.f32 %v1245_v13, %v1330_v34  ;;  %v604_v25 = vsub.f32 %v1279_v47, %v1330_v34  ;;  %v605_v33 = vsub.f32 %v1253_v26, %v1330_v34  ;;  %v606_v52 = vsub.f32 %v1248_v8, %v1330_v34 }
 0x11f   :  { %v607_v63 = vsub.f32 %v1255_v38, %v1330_v34  ;;  %v608_v49 = vsub.f32 %v1287_v41, %v1330_v34  ;;  %v609_v21 = vsub.f32 %v1273_v30, %v1330_v34  ;;  %v610_v35 = vsub.f32 %v1268_v22, %v1330_v34 }
 0x120   :  { %v611_v60 = vsub.f32 %v1276_v7, %v1330_v34  ;;  %v612_v61 = vsub.f32 %v1299_v54, %v1330_v34  ;;  %v613_v18 = vsub.f32 %v1293_v57, %v1330_v34  ;;  %v614_v29 = vsub.f32 %v1283_v31, %v1330_v34 }
 0x121   :  { %v615_v55 = vsub.f32 %v1296_v23, %v1330_v34  ;;  %v616_v5 = vsub.f32 %v1303_v58, %v1330_v34  ;;  %v617_v11 = vsub.f32 %v1311_v51, %v1330_v34  ;;  %v618_v1 = vsub.f32 %v1306_v0, %v1330_v34 }
 0x122   :  { %v619_v59 = vsub.f32 %v1314_v9, %v1330_v34  ;;  %v620_v19 = vsub.f32 %v1316_v36, %v1330_v34  ;;  %v621_v10 = vmul.f32 1.442695, %v589_v14  ;;  %v623_v20 = vmul.f32 1.442695, %v590_v39 }
 0x123   :  { %v593_v15 = vsub.f32 %v1217_v50, %v1330_v34  ;;  %v625_v16 = vmul.f32 1.442695, %v591_v53  ;;  %v594_v42 = vsub.f32 %v1213_v48, %v1330_v34  ;;  %v627_v45 = vmul.f32 1.442695, %v592_v44 }
 0x124   :  { %904 = vpow2.f32 %v621_v10  ;;  %v595_v37 = vsub.f32 %v1233_v2, %v1330_v34  ;;  %v596_v17 = vsub.f32 %v1262_v24, %v1330_v34  ;;  %v597_v50 = vsub.f32 %v1227_v62, %v1330_v34 }
 0x125   :  { %906 = vpow2.f32 %v623_v20  ;;  %v629_v32 = vmul.f32 1.442695, %v593_v15  ;;  %v631_v14 = vmul.f32 1.442695, %v594_v42  ;;  %v598_v44 = vsub.f32 %v1223_v56, %v1330_v34 }
 0x126   :  { %908 = vpow2.f32 %v625_v16  ;;  %v633_v53 = vmul.f32 1.442695, %v595_v37  ;;  %v635_v2 = vmul.f32 1.442695, %v596_v17  ;;  %v599_v24 = vsub.f32 %v1235_v3, %v1330_v34 }
 0x127   :  { %910 = vpow2.f32 %v627_v45  ;;  %v637_v16 = vmul.f32 1.442695, %v597_v50  ;;  %v600_v62 = vsub.f32 %v1265_v43, %v1330_v34  ;;  %v639_v37 = vmul.f32 1.442695, %v598_v44 }
 0x128   :  { %912 = vpow2.f32 %v629_v32  ;;  %v601_v56 = vsub.f32 %v1242_v12, %v1330_v34  ;;  %v641_v17 = vmul.f32 1.442695, %v599_v24  ;;  %v602_v3 = vsub.f32 %v1238_v6, %v1330_v34 }
 0x129   :  { %914 = vpow2.f32 %v631_v14  ;;  %v643_v50 = vmul.f32 1.442695, %v600_v62  ;;  %v649_v12 = vmul.f32 1.442695, %v603_v40  ;;  %v651_v6 = vmul.f32 1.442695, %v604_v25 }
 0x12a   :  { %v905_v46 = vpop.eup %904  ;;  %916 = vpow2.f32 %v633_v53  ;;  %v645_v43 = vmul.f32 1.442695, %v601_v56  ;;  %v653_v62 = vmul.f32 1.442695, %v605_v33  ;;  %v655_v13 = vmul.f32 1.442695, %v606_v52 }
 0x12b   :  { %v907_v39 = vpop.eup %906  ;;  %918 = vpow2.f32 %v635_v2  ;;  %v647_v2 = vmul.f32 1.442695, %v602_v3  ;;  %v657_v47 = vmul.f32 1.442695, %v607_v63  ;;  %v659_v26 = vmul.f32 1.442695, %v608_v49 }
 0x12c   :  { %v685_v10 = vadd.f32 %v907_v39, %v905_v46  ;;  %v909_v48 = vpop.eup %908  ;;  %920 = vpow2.f32 %v637_v16  ;;  %v661_v8 = vmul.f32 1.442695, %v609_v21  ;;  %v663_v38 = vmul.f32 1.442695, %v610_v35 }
 0x12d   :  { %v911_v15 = vpop.eup %910  ;;  %922 = vpow2.f32 %v639_v37  ;;  %v665_v41 = vmul.f32 1.442695, %v611_v60  ;;  %v667_v30 = vmul.f32 1.442695, %v612_v61  ;;  %v669_v22 = vmul.f32 1.442695, %v613_v18 }
 0x12e   :  { %v686_v20 = vadd.f32 %v909_v48, %v685_v10  ;;  %v913_v45 = vpop.eup %912  ;;  %924 = vpow2.f32 %v641_v17  ;;  %v671_v7 = vmul.f32 1.442695, %v614_v29  ;;  %v673_v54 = vmul.f32 1.442695, %v615_v55 }
 0x12f   :  { %v915_v46 = vpop.eup %914  ;;  %926 = vpow2.f32 %v643_v50  ;;  %v675_v57 = vmul.f32 1.442695, %v616_v5  ;;  %v677_v31 = vmul.f32 1.442695, %v617_v11  ;;  %v679_v23 = vmul.f32 1.442695, %v618_v1 }
 0x130   :  { %v687_v42 = vadd.f32 %v911_v15, %v686_v20  ;;  %v917_v39 = vpop.eup %916  ;;  %928 = vpow2.f32 %v645_v43  ;;  %v681_v58 = vmul.f32 1.442695, %v619_v59  ;;  %v683_v51 = vmul.f32 1.442695, %v620_v19 }
 0x131   :  { %v919_v10 = vpop.eup %918  ;;  %930 = vpow2.f32 %v647_v2  ;;  %v582_v59 = vmul.f32 1.442695, %v581_v4 }
 0x132   :  { %v688_v32 = vadd.f32 %v913_v45, %v687_v42  ;;  %v921_v44 = vpop.eup %920  ;;  %932 = vpow2.f32 %v649_v12 }
 0x133   :  { %v923_v15 = vpop.eup %922  ;;  %934 = vpow2.f32 %v651_v6 }
 0x134   :  { %v689_v14 = vadd.f32 %v915_v46, %v688_v32  ;;  %v925_v16 = vpop.eup %924  ;;  %936 = vpow2.f32 %v653_v62 }
 0x135   :  { %v927_v45 = vpop.eup %926  ;;  %938 = vpow2.f32 %v655_v13 }
 0x136   :  { %v690_v53 = vadd.f32 %v917_v39, %v689_v14  ;;  %v929_v32 = vpop.eup %928  ;;  %940 = vpow2.f32 %v657_v47 }
 0x137   :  { %v931_v46 = vpop.eup %930  ;;  %942 = vpow2.f32 %v659_v26 }
 0x138   :  { %v691_v48 = vadd.f32 %v919_v10, %v690_v53  ;;  %v933_v56 = vpop.eup %932  ;;  %944 = vpow2.f32 %v661_v8 }
 0x139   :  { %v935_v17 = vpop.eup %934  ;;  %946 = vpow2.f32 %v663_v38 }
 0x13a   :  { %v692_v20 = vadd.f32 %v921_v44, %v691_v48  ;;  %v937_v14 = vpop.eup %936  ;;  %948 = vpow2.f32 %v665_v41 }
 0x13b   :  { %v939_v39 = vpop.eup %938  ;;  %950 = vpow2.f32 %v667_v30 }
 0x13c   :  { %v693_v24 = vadd.f32 %v923_v15, %v692_v20  ;;  %v941_v3 = vpop.eup %940  ;;  %952 = vpow2.f32 %v669_v22 }
 0x13d   :  { %v943_v50 = vpop.eup %942  ;;  %954 = vpow2.f32 %v671_v7 }
 0x13e   :  { %v694_v42 = vadd.f32 %v925_v16, %v693_v24  ;;  %v945_v53 = vpop.eup %944  ;;  %956 = vpow2.f32 %v673_v54 }
 0x13f   :  { %v947_v10 = vpop.eup %946  ;;  %958 = vpow2.f32 %v675_v57 }
 0x140   :  { %v695_v37 = vadd.f32 %v927_v45, %v694_v42  ;;  %v949_v43 = vpop.eup %948  ;;  %960 = vpow2.f32 %v677_v31 }
 0x141   :  { %v951_v48 = vpop.eup %950  ;;  %962 = vpow2.f32 %v679_v23 }
 0x142   :  { %v696_v40 = vadd.f32 %v929_v32, %v695_v37  ;;  %v953_v44 = vpop.eup %952  ;;  %964 = vpow2.f32 %v681_v58  ;;  %v584_v32 = vld [vmem:[#allocation3] sm:$0x1] }
 0x143   :  { %v955_v2 = vpop.eup %954  ;;  %966 = vpow2.f32 %v683_v51 }
 0x144   :  { %v697_v25 = vadd.f32 %v931_v46, %v696_v40  ;;  %v957_v20 = vpop.eup %956  ;;  %968 = vpow2.f32 %v582_v59 }
 0x145   :  { %v959_v15 = vpop.eup %958 }
 0x146   :  { %v698_v33 = vadd.f32 %v933_v56, %v697_v25  ;;  %v961_v0 = vpop.eup %960 }
 0x147   :  { %v963_v24 = vpop.eup %962 }
 0x148   :  { %v699_v52 = vadd.f32 %v935_v17, %v698_v33  ;;  %v965_v6 = vpop.eup %964  ;;  %v728_v33 = vld [vmem:[#allocation2] sm:$0x1] }
 0x149   :  { %v967_v9 = vpop.eup %966 }
 0x14a   :  { %v700_v63 = vadd.f32 %v937_v14, %v699_v52  ;;  %v969_v37 = vpop.eup %968 }
 0x14b   :  { %v585_v40 = vmul.f32 %v969_v37, %v584_v32 }
 0x14c   :  { %v701_v49 = vadd.f32 %v939_v39, %v700_v63 }
 0x14e   :  { %v702_v21 = vadd.f32 %v941_v3, %v701_v49 }
 0x150   :  { %v703_v35 = vadd.f32 %v943_v50, %v702_v21 }
 0x152   :  { %v704_v60 = vadd.f32 %v945_v53, %v703_v35 }
 0x154   :  { %v705_v61 = vadd.f32 %v947_v10, %v704_v60 }
 0x156   :  { %v706_v18 = vadd.f32 %v949_v43, %v705_v61 }
 0x158   :  { %v707_v29 = vadd.f32 %v951_v48, %v706_v18 }
 0x15a   :  { %v708_v55 = vadd.f32 %v953_v44, %v707_v29 }
 0x15c   :  { %v709_v5 = vadd.f32 %v955_v2, %v708_v55 }
 0x15e   :  { %v710_v11 = vadd.f32 %v957_v20, %v709_v5 }
 0x160   :  { %v711_v12 = vadd.f32 %v959_v15, %v710_v11 }
 0x162   :  { %v712_v1 = vadd.f32 %v961_v0, %v711_v12 }
 0x164   :  { %v713_v16 = vadd.f32 %v963_v24, %v712_v1 }
 0x166   :  { %v714_v42 = vadd.f32 %v965_v6, %v713_v16 }
 0x168   :  { %v715_v45 = vadd.f32 %v967_v9, %v714_v42 }
 0x16a   :  { %v716_v62 = vrot.slane %v715_v45, 4 }
 0x16c   :  { %v717_v36 = vadd.f32 %v716_v62, %v715_v45 }
 0x16e   :  { %v718_v34 = vrot.slane %v717_v36, 2 }
 0x170   :  { %v719_v19 = vadd.f32 %v718_v34, %v717_v36 }
 0x172   :  { %v720_v13 = vrot.slane %v719_v19, 1 }
 0x174   :  { %v721_v46 = vadd.f32 %v720_v13, %v719_v19 }
 0x176   :  { %v722_v47 = vadd.f32 %v721_v46, %v585_v40 }
 0x178   :  { %723 = vst [vmem:[#allocation3] sm:$0x1] %v722_v47 }
 0x17f   :  { %v729_v25 = vld [vmem:[#allocation3] sm:$0x1] }
 0x180   :  { %970 = vlog2.f32 %v729_v25 }
 0x186   :  { %v971_v56 = vpop.eup %970 }
 0x187   :  { %v731_v26 = vmul.f32 0.6931472, %v971_v56 }
 0x189   :  { %v732_v27 = vadd.f32 %v731_v26, %v728_v33 }
 0x18b   :  { %733 = vst [vmem:[%s1460_s3] sm:$0x1] %v732_v27 }

</bundles_post_ra>
